<compile_context>
chip_gen: v6e
topology: v6e:2x2x1
jax: 0.10.0
libtpu: 0.0.40
codegen_flags: <defaults>
</compile_context>

<pallas_src>
import functools

import jax
import jax.numpy as jnp
from jax.experimental import pallas as pl
from jax.experimental.pallas import tpu as pltpu

BN_EPS = 1e-5   # PyTorch BatchNorm2d default eps
LANE = 128


def _round_up(x, m):
    return (x + m - 1) // m * m


def _pick_row_tile(H, row_tile):
    """Largest divisor of H that is <= row_tile (so the grid always tiles exactly)."""
    t = max(1, min(row_tile, H))
    while H % t != 0:
        t -= 1
    return t


def _fold_bn(gamma, beta, mean, var):
    scale = gamma / jnp.sqrt(var + BN_EPS)
    shift = beta - mean * scale
    return scale, shift


def _default_vmem_limit():
    cap = 64 * 1024 * 1024          # conservative default (v7x per-core VMEM)
    try:
        info = pltpu.get_tpu_info()
        cap = int(getattr(info, "vmem_capacity_bytes", cap))
    except Exception:
        pass
    return min(int(cap * 0.7), 100 * 1024 * 1024)


def _bottleneck_kernel(x_ref, xt_ref, xb_ref, w1_ref, b1_ref, w2_ref, b2_ref,
                       w3_ref, b3_ref, o_ref, *, no_relu):
    # x_ref:   (1, TH, W, Cin)      main row tile (bf16, NHWC) -- also the residual
    # xt_ref:  (1, 1, W, Cin)       row above the tile (clamped at the image edge)
    # xb_ref:  (1, 1, W, Cin)       row below the tile (clamped at the image edge)
    # w1_ref:  (Cin, Cmid)          1x1 conv1, BN1 scale folded in (bf16)
    # b1_ref:  (1, Cmid)            BN1 shift (f32)
    # w2_ref:  (3, 3*Cmid, Cmid)    3x3 conv2, kw folded into K (kh-major), BN2 scale folded (bf16)
    # b2_ref:  (1, Cmid)            BN2 shift (f32)
    # w3_ref:  (Cmid, Cout)         1x1 conv3, BN3 scale folded in (bf16)
    # b3_ref:  (1, Cout)            BN3 shift (f32)
    # o_ref:   (1, TH, W, Cout)     bf16
    TH, W, Cin = x_ref.shape[1], x_ref.shape[2], x_ref.shape[3]
    Cmid = w1_ref.shape[1]
    Cout = w3_ref.shape[1]

    i = pl.program_id(1)
    last = pl.num_programs(1) - 1

    w1 = w1_ref[...]
    b1 = b1_ref[...]

    def conv1_bn_relu(rows):            # (R, W, Cin) bf16 -> (R, W, Cmid) bf16
        r = rows.shape[0]
        y = jnp.dot(rows.reshape(r * W, Cin), w1,
                    preferred_element_type=jnp.float32) + b1
        return jnp.maximum(y, 0.0).astype(jnp.bfloat16).reshape(r, W, Cmid)

    # conv1 + BN1 + ReLU for the tile rows and the two halo rows.
    y1 = conv1_bn_relu(x_ref[0])                               # (TH, W, Cmid)
    t_top = conv1_bn_relu(xt_ref[0])                           # (1, W, Cmid)
    t_bot = conv1_bn_relu(xb_ref[0])                           # (1, W, Cmid)
    # Outside the image the 3x3 conv sees zeros (SAME padding on the activation).
    t_top = jnp.where(i == 0, jnp.zeros_like(t_top), t_top)
    t_bot = jnp.where(i == last, jnp.zeros_like(t_bot), t_bot)

    # Halo-extended conv1 output as a value (no scratch, no border-column stores).
    y = jnp.concatenate([t_top, y1, t_bot], axis=0)            # (TH+2, W, Cmid)

    # kw folded into the contraction dim: [neighbour(w-1), centre, neighbour(w+1)]
    # concatenated along channels -> operands of shape (TH*W, 3*Cmid).
    zcol = jnp.zeros((TH + 2, 1, Cmid), jnp.bfloat16)
    y_m1 = jnp.concatenate([zcol, y[:, :W - 1, :]], axis=1)    # value at w-1 (zero at w=0)
    y_p1 = jnp.concatenate([y[:, 1:, :], zcol], axis=1)        # value at w+1 (zero at w=W-1)
    ycat = jnp.concatenate([y_m1, y, y_p1], axis=-1)           # (TH+2, W, 3*Cmid)

    # conv2 (3x3) as 3 MXU matmuls with K = 3*Cmid; pure dot-accumulate chain,
    # BN2 shift added in the epilogue.
    acc = None
    for kh in range(3):
        a = ycat[kh:kh + TH].reshape(TH * W, 3 * Cmid)
        d = jnp.dot(a, w2_ref[kh], preferred_element_type=jnp.float32)
        acc = d if acc is None else acc + d
    y2 = jnp.maximum(acc + b2_ref[...], 0.0).astype(jnp.bfloat16)   # BN2 + ReLU

    # conv3 (1x1) + BN3 + residual (+ optional ReLU). Residual re-read here so its
    # live range does not span the whole body.
    out = jnp.dot(y2, w3_ref[...], preferred_element_type=jnp.float32)
    out = out + b3_ref[...] + x_ref[0].reshape(TH * W, Cin).astype(jnp.float32)
    if not no_relu:
        out = jnp.maximum(out, 0.0)
    o_ref[0] = out.reshape(TH, W, Cout).astype(o_ref.dtype)


def prepare_params(params):
    """Fold eval-mode BN into the conv weights, pad channels to 128 and pack conv2.

    Do this once per block; the result can be reused across many forward calls.
    """
    Cin, Cmid = params["w1"].shape
    Cout = params["w3"].shape[1]

    s1, b1 = _fold_bn(params["gamma1"], params["beta1"], params["mean1"], params["var1"])
    s2, b2 = _fold_bn(params["gamma2"], params["beta2"], params["mean2"], params["var2"])
    s3, b3 = _fold_bn(params["gamma3"], params["beta3"], params["mean3"], params["var3"])
    w1f = params["w1"] * s1[None, :]                      # (Cin, Cmid)
    w2f = params["w2"] * s2[None, None, None, :]          # (3, 3, Cmid, Cmid) HWIO
    w3f = params["w3"] * s3[None, :]                      # (Cmid, Cout)

    Cin_p = _round_up(Cin, LANE)
    Cmid_p = _round_up(Cmid, LANE)
    Cout_p = _round_up(Cout, LANE)

    w1_p = jnp.pad(w1f, ((0, Cin_p - Cin), (0, Cmid_p - Cmid))).astype(jnp.bfloat16)
    b1_p = jnp.pad(b1, (0, Cmid_p - Cmid)).reshape(1, Cmid_p).astype(jnp.float32)
    # (3, 3, Cmid_p, Cmid_p) -> (3, 3*Cmid_p, Cmid_p): K index = kw*Cmid_p + cin.
    w2_p = jnp.pad(w2f, ((0, 0), (0, 0), (0, Cmid_p - Cmid), (0, Cmid_p - Cmid)))
    w2_p = w2_p.reshape(3, 3 * Cmid_p, Cmid_p).astype(jnp.bfloat16)
    b2_p = jnp.pad(b2, (0, Cmid_p - Cmid)).reshape(1, Cmid_p).astype(jnp.float32)
    w3_p = jnp.pad(w3f, ((0, Cmid_p - Cmid), (0, Cout_p - Cout))).astype(jnp.bfloat16)
    b3_p = jnp.pad(b3, (0, Cout_p - Cout)).reshape(1, Cout_p).astype(jnp.float32)

    return dict(w1=w1_p, b1=b1_p, w2=w2_p, b2=b2_p, w3=w3_p, b3=b3_p,
                Cin=Cin, Cmid=Cmid, Cout=Cout,
                Cin_p=Cin_p, Cmid_p=Cmid_p, Cout_p=Cout_p)


def bottleneck_forward_nhwc(x_nhwc, prep, *, no_relu=True, row_tile=32,
                            vmem_limit_bytes=None):
    """Bottleneck forward on channel-padded NHWC bf16 activations (no layout glue)."""
    N, H, W, Cin_p = x_nhwc.shape
    assert Cin_p == prep["Cin_p"]
    Cmid_p, Cout_p = prep["Cmid_p"], prep["Cout_p"]
    if prep["Cout"] != prep["Cin"]:
        raise ValueError("identity-residual path requires inplanes == planes*expansion")

    TH = _pick_row_tile(H, row_tile)
    n_row_tiles = H // TH
    if vmem_limit_bytes is None:
        vmem_limit_bytes = _default_vmem_limit()

    row_reads = N * n_row_tiles * (TH + 2) * W          # includes halo re-reads
    flops = 2 * (row_reads * Cin_p * Cmid_p
                 + N * H * W * 3 * (3 * Cmid_p) * Cmid_p
                 + N * H * W * Cmid_p * Cout_p)
    bytes_accessed = (row_reads * Cin_p * 2
                      + N * H * W * Cout_p * 2
                      + (prep["w1"].size + prep["w2"].size + prep["w3"].size) * 2
                      + (prep["b1"].size + prep["b2"].size + prep["b3"].size) * 4)

    kernel = functools.partial(_bottleneck_kernel, no_relu=no_relu)

    return pl.pallas_call(
        kernel,
        out_shape=jax.ShapeDtypeStruct((N, H, W, Cout_p), jnp.bfloat16),
        grid=(N, n_row_tiles),
        in_specs=[
            pl.BlockSpec((1, TH, W, Cin_p), lambda n, i: (n, i, 0, 0)),
            # one-row halos above / below the tile (clamped at the edge, zeroed in-kernel)
            pl.BlockSpec((1, 1, W, Cin_p),
                         lambda n, i: (n, jnp.maximum(i * TH - 1, 0), 0, 0)),
            pl.BlockSpec((1, 1, W, Cin_p),
                         lambda n, i: (n, jnp.minimum(i * TH + TH, H - 1), 0, 0)),
            pl.BlockSpec((Cin_p, Cmid_p), lambda n, i: (0, 0)),
            pl.BlockSpec((1, Cmid_p), lambda n, i: (0, 0)),
            pl.BlockSpec((3, 3 * Cmid_p, Cmid_p), lambda n, i: (0, 0, 0)),
            pl.BlockSpec((1, Cmid_p), lambda n, i: (0, 0)),
            pl.BlockSpec((Cmid_p, Cout_p), lambda n, i: (0, 0)),
            pl.BlockSpec((1, Cout_p), lambda n, i: (0, 0)),
        ],
        out_specs=pl.BlockSpec((1, TH, W, Cout_p), lambda n, i: (n, i, 0, 0)),
        compiler_params=pltpu.CompilerParams(
            dimension_semantics=("parallel", "parallel"),
            vmem_limit_bytes=vmem_limit_bytes),
        cost_estimate=pl.CostEstimate(flops=flops, transcendentals=0,
                                      bytes_accessed=bytes_accessed),
    )(x_nhwc, x_nhwc, x_nhwc,
      prep["w1"], prep["b1"], prep["w2"], prep["b2"], prep["w3"], prep["b3"])


def bottleneck_forward(x_nchw, params, *, no_relu=True, row_tile=32):
    """Equivalent of Bottleneck.forward (eval-mode BN, stride=1, downsample=None).

    NCHW f32 in / NCHW f32 out. For multi-block networks, keep activations in padded
    NHWC bf16 and call bottleneck_forward_nhwc directly to avoid the layout glue.
    """
    prep = prepare_params(params)
    N, Cin, H, W = x_nchw.shape
    if prep["Cout"] != Cin:
        raise ValueError("identity-residual path requires inplanes == planes*expansion")

    x = jnp.transpose(x_nchw, (0, 2, 3, 1)).astype(jnp.bfloat16)
    x_p = jnp.pad(x, ((0, 0), (0, 0), (0, 0), (0, prep["Cin_p"] - Cin)))

    out_p = bottleneck_forward_nhwc(x_p, prep, no_relu=no_relu, row_tile=row_tile)

    out = out_p[..., :prep["Cout"]].astype(x_nchw.dtype)   # drop lane padding, back to f32
    return jnp.transpose(out, (0, 3, 1, 2))                # NHWC -> NCHW


def _reference_forward(x_nchw, params, *, no_relu=True):
    """Pure-JAX f32 reference (lax conv) for correctness checking."""
    x = jnp.transpose(x_nchw, (0, 2, 3, 1)).astype(jnp.float32)
    s1, b1 = _fold_bn(params["gamma1"], params["beta1"], params["mean1"], params["var1"])
    s2, b2 = _fold_bn(params["gamma2"], params["beta2"], params["mean2"], params["var2"])
    s3, b3 = _fold_bn(params["gamma3"], params["beta3"], params["mean3"], params["var3"])
    y1 = jnp.maximum(jnp.einsum("nhwc,cd->nhwd", x, params["w1"]) * s1 + b1, 0.0)
    c2 = jax.lax.conv_general_dilated(
        y1, params["w2"], (1, 1), "SAME",
        dimension_numbers=("NHWC", "HWIO", "NHWC"))
    y2 = jnp.maximum(c2 * s2 + b2, 0.0)
    out = jnp.einsum("nhwc,cd->nhwd", y2, params["w3"]) * s3 + b3 + x
    if not no_relu:
        out = jnp.maximum(out, 0.0)
    return jnp.transpose(out, (0, 3, 1, 2))


if __name__ == "__main__":
    key = jax.random.PRNGKey(0)
    planes = 4
    inplanes = planes * 2            # expansion = 2, identity residual
    N, H, W = 2, 16, 16
    Cin, Cmid, Cout = inplanes, planes, planes * 2

    ks = jax.random.split(key, 16)
    x = jax.random.normal(ks[0], (N, Cin, H, W), jnp.float32)
    params = {
        "w1": 0.1 * jax.random.normal(ks[1], (Cin, Cmid), jnp.float32),
        "gamma1": 1.0 + 0.1 * jax.random.normal(ks[2], (Cmid,), jnp.float32),
        "beta1": 0.1 * jax.random.normal(ks[3], (Cmid,), jnp.float32),
        "mean1": 0.1 * jax.random.normal(ks[4], (Cmid,), jnp.float32),
        "var1": jax.random.uniform(ks[5], (Cmid,), jnp.float32, 0.5, 1.5),
        "w2": 0.1 * jax.random.normal(ks[6], (3, 3, Cmid, Cmid), jnp.float32),
        "gamma2": 1.0 + 0.1 * jax.random.normal(ks[7], (Cmid,), jnp.float32),
        "beta2": 0.1 * jax.random.normal(ks[8], (Cmid,), jnp.float32),
        "mean2": 0.1 * jax.random.normal(ks[9], (Cmid,), jnp.float32),
        "var2": jax.random.uniform(ks[10], (Cmid,), jnp.float32, 0.5, 1.5),
        "w3": 0.1 * jax.random.normal(ks[11], (Cmid, Cout), jnp.float32),
        "gamma3": 1.0 + 0.1 * jax.random.normal(ks[12], (Cout,), jnp.float32),
        "beta3": 0.1 * jax.random.normal(ks[13], (Cout,), jnp.float32),
        "mean3": 0.1 * jax.random.normal(ks[14], (Cout,), jnp.float32),
        "var3": jax.random.uniform(ks[15], (Cout,), jnp.float32, 0.5, 1.5),
    }

    ref = _reference_forward(x, params, no_relu=True)

    # Multi-row-tile path (exercises the halo logic): TH = 8 -> grid (2, 2).
    out_a = jax.block_until_ready(bottleneck_forward(x, params, no_relu=True, row_tile=8))
    assert out_a.shape == (N, Cout, H, W), out_a.shape
    err_a = float(jnp.max(jnp.abs(out_a - ref)))
    assert jnp.allclose(out_a, ref, rtol=2e-2, atol=2e-2), err_a

    # Default tile (TH = 16 here -> single row tile per image).
    out_b = jax.block_until_ready(bottleneck_forward(x, params, no_relu=True))
    err_b = float(jnp.max(jnp.abs(out_b - ref)))
    assert jnp.allclose(out_b, ref, rtol=2e-2, atol=2e-2), err_b

    print("KERNEL_OK")
</pallas_src>

<mosaic_0001>
module attributes {stable_mosaic.version = 11 : i64} {
  func.func @_bottleneck_kernel(%arg0: i32, %arg1: i32, %arg2: memref<1x8x16x128xbf16, #tpu.memory_space<vmem>>, %arg3: memref<1x1x16x128xbf16, #tpu.memory_space<vmem>>, %arg4: memref<1x1x16x128xbf16, #tpu.memory_space<vmem>>, %arg5: memref<128x128xbf16, #tpu.memory_space<vmem>>, %arg6: memref<1x128xf32, #tpu.memory_space<vmem>>, %arg7: memref<3x384x128xbf16, #tpu.memory_space<vmem>>, %arg8: memref<1x128xf32, #tpu.memory_space<vmem>>, %arg9: memref<128x128xbf16, #tpu.memory_space<vmem>>, %arg10: memref<1x128xf32, #tpu.memory_space<vmem>>, %arg11: memref<1x8x16x128xbf16, #tpu.memory_space<vmem>>) attributes {dimension_semantics = [#tpu.dimension_semantics<parallel>, #tpu.dimension_semantics<parallel>], iteration_bounds = array<i64: 2, 2>, scalar_prefetch = 0 : i64, scratch_operands = 0 : i64, tpu.core_type = #tpu.core_type<tc>, window_params = [{transform_indices = @transform_0, window_bounds = array<i64: 1, 8, 16, 128>}, {transform_indices = @transform_1, window_bounds = array<i64: 1, 1, 16, 128>}, {transform_indices = @transform_2, window_bounds = array<i64: 1, 1, 16, 128>}, {pipeline_mode = #tpu.pipeline_mode<synchronous>, transform_indices = @transform_3, window_bounds = array<i64: 128, 128>}, {pipeline_mode = #tpu.pipeline_mode<synchronous>, transform_indices = @transform_4, window_bounds = array<i64: 1, 128>}, {pipeline_mode = #tpu.pipeline_mode<synchronous>, transform_indices = @transform_5, window_bounds = array<i64: 3, 384, 128>}, {pipeline_mode = #tpu.pipeline_mode<synchronous>, transform_indices = @transform_6, window_bounds = array<i64: 1, 128>}, {pipeline_mode = #tpu.pipeline_mode<synchronous>, transform_indices = @transform_7, window_bounds = array<i64: 128, 128>}, {pipeline_mode = #tpu.pipeline_mode<synchronous>, transform_indices = @transform_8, window_bounds = array<i64: 1, 128>}, {transform_indices = @transform_9, window_bounds = array<i64: 1, 8, 16, 128>}]} {
    %c0 = arith.constant 0 : index
    %c0_0 = arith.constant 0 : index
    %0 = vector.load %arg5[%c0, %c0_0] : memref<128x128xbf16, #tpu.memory_space<vmem>>, vector<128x128xbf16>
    %c0_1 = arith.constant 0 : index
    %c0_2 = arith.constant 0 : index
    %1 = vector.load %arg6[%c0_1, %c0_2] : memref<1x128xf32, #tpu.memory_space<vmem>>, vector<1x128xf32>
    %c0_3 = arith.constant 0 : index
    %c0_4 = arith.constant 0 : index
    %c0_5 = arith.constant 0 : index
    %c0_6 = arith.constant 0 : index
    %2 = vector.load %arg2[%c0_3, %c0_4, %c0_5, %c0_6] : memref<1x8x16x128xbf16, #tpu.memory_space<vmem>>, vector<1x8x16x128xbf16>
    %3 = vector.shape_cast %2 : vector<1x8x16x128xbf16> to vector<8x16x128xbf16>
    %4 = vector.shape_cast %3 : vector<8x16x128xbf16> to vector<128x128xbf16>
    %cst = arith.constant dense<0.000000e+00> : vector<128x128xf32>
    %5 = tpu.matmul %4, %0, %cst {dimension_numbers = #tpu.dot_dimension_numbers<[1], [0], [0], [1], [0, 0, 1, 1], [], []>} : vector<128x128xbf16>, vector<128x128xbf16>, vector<128x128xf32> -> vector<128x128xf32>
    %6 = vector.broadcast %1 : vector<1x128xf32> to vector<128x128xf32>
    %7 = arith.addf %5, %6 : vector<128x128xf32>
    %cst_7 = arith.constant 0.000000e+00 : f32
    %8 = vector.broadcast %cst_7 : f32 to vector<128x128xf32>
    %9 = arith.maximumf %7, %8 : vector<128x128xf32>
    %10 = arith.truncf %9 : vector<128x128xf32> to vector<128x128xbf16>
    %11 = vector.shape_cast %10 : vector<128x128xbf16> to vector<8x16x128xbf16>
    %c0_8 = arith.constant 0 : index
    %c0_9 = arith.constant 0 : index
    %c0_10 = arith.constant 0 : index
    %c0_11 = arith.constant 0 : index
    %12 = vector.load %arg3[%c0_8, %c0_9, %c0_10, %c0_11] : memref<1x1x16x128xbf16, #tpu.memory_space<vmem>>, vector<1x1x16x128xbf16>
    %13 = vector.shape_cast %12 : vector<1x1x16x128xbf16> to vector<1x16x128xbf16>
    %14 = vector.shape_cast %13 : vector<1x16x128xbf16> to vector<16x128xbf16>
    %cst_12 = arith.constant dense<0.000000e+00> : vector<16x128xf32>
    %15 = tpu.matmul %14, %0, %cst_12 {dimension_numbers = #tpu.dot_dimension_numbers<[1], [0], [0], [1], [0, 0, 1, 1], [], []>} : vector<16x128xbf16>, vector<128x128xbf16>, vector<16x128xf32> -> vector<16x128xf32>
    %16 = vector.broadcast %1 : vector<1x128xf32> to vector<16x128xf32>
    %17 = arith.addf %15, %16 : vector<16x128xf32>
    %cst_13 = arith.constant 0.000000e+00 : f32
    %18 = vector.broadcast %cst_13 : f32 to vector<16x128xf32>
    %19 = arith.maximumf %17, %18 : vector<16x128xf32>
    %20 = arith.truncf %19 : vector<16x128xf32> to vector<16x128xbf16>
    %21 = vector.shape_cast %20 : vector<16x128xbf16> to vector<1x16x128xbf16>
    %c0_14 = arith.constant 0 : index
    %c0_15 = arith.constant 0 : index
    %c0_16 = arith.constant 0 : index
    %c0_17 = arith.constant 0 : index
    %22 = vector.load %arg4[%c0_14, %c0_15, %c0_16, %c0_17] : memref<1x1x16x128xbf16, #tpu.memory_space<vmem>>, vector<1x1x16x128xbf16>
    %23 = vector.shape_cast %22 : vector<1x1x16x128xbf16> to vector<1x16x128xbf16>
    %24 = vector.shape_cast %23 : vector<1x16x128xbf16> to vector<16x128xbf16>
    %cst_18 = arith.constant dense<0.000000e+00> : vector<16x128xf32>
    %25 = tpu.matmul %24, %0, %cst_18 {dimension_numbers = #tpu.dot_dimension_numbers<[1], [0], [0], [1], [0, 0, 1, 1], [], []>} : vector<16x128xbf16>, vector<128x128xbf16>, vector<16x128xf32> -> vector<16x128xf32>
    %26 = vector.broadcast %1 : vector<1x128xf32> to vector<16x128xf32>
    %27 = arith.addf %25, %26 : vector<16x128xf32>
    %cst_19 = arith.constant 0.000000e+00 : f32
    %28 = vector.broadcast %cst_19 : f32 to vector<16x128xf32>
    %29 = arith.maximumf %27, %28 : vector<16x128xf32>
    %30 = arith.truncf %29 : vector<16x128xf32> to vector<16x128xbf16>
    %31 = vector.shape_cast %30 : vector<16x128xbf16> to vector<1x16x128xbf16>
    %c0_i32 = arith.constant 0 : i32
    %32 = arith.cmpi eq, %arg1, %c0_i32 : i32
    %cst_20 = arith.constant 0.000000e+00 : bf16
    %33 = vector.broadcast %cst_20 : bf16 to vector<1x16x128xbf16>
    %34 = arith.select %32, %33, %21 : vector<1x16x128xbf16>
    %c1_i32 = arith.constant 1 : i32
    %35 = arith.cmpi eq, %arg1, %c1_i32 : i32
    %cst_21 = arith.constant 0.000000e+00 : bf16
    %36 = vector.broadcast %cst_21 : bf16 to vector<1x16x128xbf16>
    %37 = arith.select %35, %36, %31 : vector<1x16x128xbf16>
    %38 = tpu.concatenate %34, %11, %37 in 0 : vector<1x16x128xbf16>, vector<8x16x128xbf16>, vector<1x16x128xbf16> -> vector<10x16x128xbf16>
    %cst_22 = arith.constant 0.000000e+00 : bf16
    %39 = vector.broadcast %cst_22 : bf16 to vector<10x1x128xbf16>
    %40 = vector.extract_strided_slice %38 {offsets = [0, 0, 0], sizes = [10, 15, 128], strides = [1, 1, 1]} : vector<10x16x128xbf16> to vector<10x15x128xbf16>
    %41 = tpu.concatenate %39, %40 in 1 : vector<10x1x128xbf16>, vector<10x15x128xbf16> -> vector<10x16x128xbf16>
    %42 = vector.extract_strided_slice %38 {offsets = [0, 1, 0], sizes = [10, 15, 128], strides = [1, 1, 1]} : vector<10x16x128xbf16> to vector<10x15x128xbf16>
    %43 = tpu.concatenate %42, %39 in 1 : vector<10x15x128xbf16>, vector<10x1x128xbf16> -> vector<10x16x128xbf16>
    %44 = tpu.concatenate %41, %38, %43 in 2 : vector<10x16x128xbf16>, vector<10x16x128xbf16>, vector<10x16x128xbf16> -> vector<10x16x384xbf16>
    %45 = vector.extract_strided_slice %44 {offsets = [0, 0, 0], sizes = [8, 16, 384], strides = [1, 1, 1]} : vector<10x16x384xbf16> to vector<8x16x384xbf16>
    %46 = vector.shape_cast %45 : vector<8x16x384xbf16> to vector<128x384xbf16>
    %c0_23 = arith.constant 0 : index
    %c0_24 = arith.constant 0 : index
    %c0_25 = arith.constant 0 : index
    %47 = vector.load %arg7[%c0_23, %c0_24, %c0_25] : memref<3x384x128xbf16, #tpu.memory_space<vmem>>, vector<1x384x128xbf16>
    %48 = vector.shape_cast %47 : vector<1x384x128xbf16> to vector<384x128xbf16>
    %cst_26 = arith.constant dense<0.000000e+00> : vector<128x128xf32>
    %49 = tpu.matmul %46, %48, %cst_26 {dimension_numbers = #tpu.dot_dimension_numbers<[1], [0], [0], [1], [0, 0, 1, 1], [], []>} : vector<128x384xbf16>, vector<384x128xbf16>, vector<128x128xf32> -> vector<128x128xf32>
    %50 = vector.extract_strided_slice %44 {offsets = [1, 0, 0], sizes = [8, 16, 384], strides = [1, 1, 1]} : vector<10x16x384xbf16> to vector<8x16x384xbf16>
    %51 = vector.shape_cast %50 : vector<8x16x384xbf16> to vector<128x384xbf16>
    %c1 = arith.constant 1 : index
    %c0_27 = arith.constant 0 : index
    %c0_28 = arith.constant 0 : index
    %52 = vector.load %arg7[%c1, %c0_27, %c0_28] : memref<3x384x128xbf16, #tpu.memory_space<vmem>>, vector<1x384x128xbf16>
    %53 = vector.shape_cast %52 : vector<1x384x128xbf16> to vector<384x128xbf16>
    %cst_29 = arith.constant dense<0.000000e+00> : vector<128x128xf32>
    %54 = tpu.matmul %51, %53, %cst_29 {dimension_numbers = #tpu.dot_dimension_numbers<[1], [0], [0], [1], [0, 0, 1, 1], [], []>} : vector<128x384xbf16>, vector<384x128xbf16>, vector<128x128xf32> -> vector<128x128xf32>
    %55 = arith.addf %49, %54 : vector<128x128xf32>
    %56 = vector.extract_strided_slice %44 {offsets = [2, 0, 0], sizes = [8, 16, 384], strides = [1, 1, 1]} : vector<10x16x384xbf16> to vector<8x16x384xbf16>
    %57 = vector.shape_cast %56 : vector<8x16x384xbf16> to vector<128x384xbf16>
    %c2 = arith.constant 2 : index
    %c0_30 = arith.constant 0 : index
    %c0_31 = arith.constant 0 : index
    %58 = vector.load %arg7[%c2, %c0_30, %c0_31] : memref<3x384x128xbf16, #tpu.memory_space<vmem>>, vector<1x384x128xbf16>
    %59 = vector.shape_cast %58 : vector<1x384x128xbf16> to vector<384x128xbf16>
    %cst_32 = arith.constant dense<0.000000e+00> : vector<128x128xf32>
    %60 = tpu.matmul %57, %59, %cst_32 {dimension_numbers = #tpu.dot_dimension_numbers<[1], [0], [0], [1], [0, 0, 1, 1], [], []>} : vector<128x384xbf16>, vector<384x128xbf16>, vector<128x128xf32> -> vector<128x128xf32>
    %61 = arith.addf %55, %60 : vector<128x128xf32>
    %c0_33 = arith.constant 0 : index
    %c0_34 = arith.constant 0 : index
    %62 = vector.load %arg8[%c0_33, %c0_34] : memref<1x128xf32, #tpu.memory_space<vmem>>, vector<1x128xf32>
    %63 = vector.broadcast %62 : vector<1x128xf32> to vector<128x128xf32>
    %64 = arith.addf %61, %63 : vector<128x128xf32>
    %cst_35 = arith.constant 0.000000e+00 : f32
    %65 = vector.broadcast %cst_35 : f32 to vector<128x128xf32>
    %66 = arith.maximumf %64, %65 : vector<128x128xf32>
    %67 = arith.truncf %66 : vector<128x128xf32> to vector<128x128xbf16>
    %c0_36 = arith.constant 0 : index
    %c0_37 = arith.constant 0 : index
    %68 = vector.load %arg9[%c0_36, %c0_37] : memref<128x128xbf16, #tpu.memory_space<vmem>>, vector<128x128xbf16>
    %cst_38 = arith.constant dense<0.000000e+00> : vector<128x128xf32>
    %69 = tpu.matmul %67, %68, %cst_38 {dimension_numbers = #tpu.dot_dimension_numbers<[1], [0], [0], [1], [0, 0, 1, 1], [], []>} : vector<128x128xbf16>, vector<128x128xbf16>, vector<128x128xf32> -> vector<128x128xf32>
    %c0_39 = arith.constant 0 : index
    %c0_40 = arith.constant 0 : index
    %70 = vector.load %arg10[%c0_39, %c0_40] : memref<1x128xf32, #tpu.memory_space<vmem>>, vector<1x128xf32>
    %71 = vector.broadcast %70 : vector<1x128xf32> to vector<128x128xf32>
    %72 = arith.addf %69, %71 : vector<128x128xf32>
    %c0_41 = arith.constant 0 : index
    %c0_42 = arith.constant 0 : index
    %c0_43 = arith.constant 0 : index
    %c0_44 = arith.constant 0 : index
    %73 = vector.load %arg2[%c0_41, %c0_42, %c0_43, %c0_44] : memref<1x8x16x128xbf16, #tpu.memory_space<vmem>>, vector<1x8x16x128xbf16>
    %74 = vector.shape_cast %73 : vector<1x8x16x128xbf16> to vector<8x16x128xbf16>
    %75 = vector.shape_cast %74 : vector<8x16x128xbf16> to vector<128x128xbf16>
    %76 = arith.extf %75 : vector<128x128xbf16> to vector<128x128xf32>
    %77 = arith.addf %72, %76 : vector<128x128xf32>
    %78 = vector.shape_cast %77 : vector<128x128xf32> to vector<8x16x128xf32>
    %79 = arith.truncf %78 : vector<8x16x128xf32> to vector<8x16x128xbf16>
    %c0_45 = arith.constant 0 : index
    %c0_46 = arith.constant 0 : index
    %c0_47 = arith.constant 0 : index
    %c0_48 = arith.constant 0 : index
    %80 = vector.load %arg11[%c0_45, %c0_46, %c0_47, %c0_48] : memref<1x8x16x128xbf16, #tpu.memory_space<vmem>>, vector<1x8x16x128xbf16>
    %81 = vector.shape_cast %80 : vector<1x8x16x128xbf16> to vector<8x16x128xbf16>
    %82 = vector.shape_cast %79 : vector<8x16x128xbf16> to vector<1x8x16x128xbf16>
    tpu.vector_store %arg11[%c0_45, %c0_46, %c0_47, %c0_48], %82 {strides = array<i32>} : memref<1x8x16x128xbf16, #tpu.memory_space<vmem>>, vector<1x8x16x128xbf16>,
    return
  }
  func.func @transform_0(%arg0: i32, %arg1: i32) -> (i32, i32, i32, i32) {
    %c0_i32 = arith.constant 0 : i32
    %c0_i32_0 = arith.constant 0 : i32
    %c0_i32_1 = arith.constant 0 : i32
    return %arg0, %arg1, %c0_i32, %c0_i32_0 : i32, i32, i32, i32
  }
  func.func @transform_1(%arg0: i32, %arg1: i32) -> (i32, i32, i32, i32) {
    %c8_i32 = arith.constant 8 : i32
    %0 = arith.muli %arg1, %c8_i32 : i32
    %c1_i32 = arith.constant 1 : i32
    %1 = arith.subi %0, %c1_i32 : i32
    %c0_i32 = arith.constant 0 : i32
    %2 = arith.maxsi %1, %c0_i32 : i32
    %c0_i32_0 = arith.constant 0 : i32
    %c0_i32_1 = arith.constant 0 : i32
    %c0_i32_2 = arith.constant 0 : i32
    return %arg0, %2, %c0_i32_0, %c0_i32_1 : i32, i32, i32, i32
  }
  func.func @transform_2(%arg0: i32, %arg1: i32) -> (i32, i32, i32, i32) {
    %c8_i32 = arith.constant 8 : i32
    %0 = arith.muli %arg1, %c8_i32 : i32
    %c8_i32_0 = arith.constant 8 : i32
    %1 = arith.addi %0, %c8_i32_0 : i32
    %c15_i32 = arith.constant 15 : i32
    %2 = arith.minsi %1, %c15_i32 : i32
    %c0_i32 = arith.constant 0 : i32
    %c0_i32_1 = arith.constant 0 : i32
    %c0_i32_2 = arith.constant 0 : i32
    return %arg0, %2, %c0_i32, %c0_i32_1 : i32, i32, i32, i32
  }
  func.func @transform_3(%arg0: i32, %arg1: i32) -> (i32, i32) {
    %c0_i32 = arith.constant 0 : i32
    %c0_i32_0 = arith.constant 0 : i32
    %c0_i32_1 = arith.constant 0 : i32
    return %c0_i32, %c0_i32_0 : i32, i32
  }
  func.func @transform_4(%arg0: i32, %arg1: i32) -> (i32, i32) {
    %c0_i32 = arith.constant 0 : i32
    %c0_i32_0 = arith.constant 0 : i32
    %c0_i32_1 = arith.constant 0 : i32
    return %c0_i32, %c0_i32_0 : i32, i32
  }
  func.func @transform_5(%arg0: i32, %arg1: i32) -> (i32, i32, i32) {
    %c0_i32 = arith.constant 0 : i32
    %c0_i32_0 = arith.constant 0 : i32
    %c0_i32_1 = arith.constant 0 : i32
    %c0_i32_2 = arith.constant 0 : i32
    return %c0_i32, %c0_i32_0, %c0_i32_1 : i32, i32, i32
  }
  func.func @transform_6(%arg0: i32, %arg1: i32) -> (i32, i32) {
    %c0_i32 = arith.constant 0 : i32
    %c0_i32_0 = arith.constant 0 : i32
    %c0_i32_1 = arith.constant 0 : i32
    return %c0_i32, %c0_i32_0 : i32, i32
  }
  func.func @transform_7(%arg0: i32, %arg1: i32) -> (i32, i32) {
    %c0_i32 = arith.constant 0 : i32
    %c0_i32_0 = arith.constant 0 : i32
    %c0_i32_1 = arith.constant 0 : i32
    return %c0_i32, %c0_i32_0 : i32, i32
  }
  func.func @transform_8(%arg0: i32, %arg1: i32) -> (i32, i32) {
    %c0_i32 = arith.constant 0 : i32
    %c0_i32_0 = arith.constant 0 : i32
    %c0_i32_1 = arith.constant 0 : i32
    return %c0_i32, %c0_i32_0 : i32, i32
  }
  func.func @transform_9(%arg0: i32, %arg1: i32) -> (i32, i32, i32, i32) {
    %c0_i32 = arith.constant 0 : i32
    %c0_i32_0 = arith.constant 0 : i32
    %c0_i32_1 = arith.constant 0 : i32
    return %arg0, %arg1, %c0_i32, %c0_i32_0 : i32, i32, i32, i32
  }
}

</mosaic_0001>

<bundles_post_ra>
// kernel: tpu_custom_call.1
= control target key start
LH: loop header
LB: loop body
LE: loop exit
PB: predicated region body
PF: predicated region fallthrough
CT: control target
= control target key end

     0   :  { %s5098_s0 = inlined_call_operand.hbm [shape: bf16[2,16,16,128], index: 0, kind: input, shape index: {}]   ;;  %s5099_s1 = inlined_call_operand.hbm [shape: bf16[2,16,16,128], index: 1, kind: input, shape index: {}]   ;;  %s5100_s2 = inlined_call_operand.hbm [shape: bf16[2,16,16,128], index: 2, kind: input, shape index: {}]   ;;  %s5101_s3 = inlined_call_operand.hbm [shape: bf16[128,128], index: 3, kind: input, shape index: {}]   ;;  %s5102_s4 = inlined_call_operand.vmem [shape: f32[1,128], index: 4, kind: input, shape index: {}]   ;;  %s5103_s5 = inlined_call_operand.hbm [shape: bf16[3,384,128], index: 5, kind: input, shape index: {}]   ;;  %s5104_s6 = inlined_call_operand.vmem [shape: f32[1,128], index: 6, kind: input, shape index: {}]   ;;  %s5105_s7 = inlined_call_operand.hbm [shape: bf16[128,128], index: 7, kind: input, shape index: {}]   ;;  %s5106_s8 = inlined_call_operand.vmem [shape: f32[1,128], index: 8, kind: input, shape index: {}]   ;;  %s5107_s9 = inlined_call_operand.hbm [shape: bf16[2,16,16,128], index: 9, kind: output, shape index: {}]  }
   0x1   :  { %5132 = sst [smem:[#allocation35_spill]] %s5098_s0 }
   0x2   :  { %5133 = sst [smem:[#allocation36_spill]] %s5099_s1 }
   0x3   :  { %5134 = sst [smem:[#allocation37_spill]] %s5100_s2 }
   0x4   :  { %5135 = sst [smem:[#allocation38_spill]] %s5101_s3 }
   0x5   :  { %5136 = sst [smem:[#allocation39_spill]] %s5102_s4 }
   0x6   :  { %5137 = sst [smem:[#allocation40_spill]] %s5103_s5 }
   0x7   :  { %5138 = sst [smem:[#allocation41_spill]] %s5104_s6 }
   0x8   :  { %5139 = sst [smem:[#allocation42_spill]] %s5105_s7 }
   0x9   :  { %5140 = sst [smem:[#allocation43_spill]] %s5106_s8 }
   0xa   :  { %5141 = sst [smem:[#allocation44_spill]] %s5107_s9 }
   0xb   :  { %14 = vsyncpa [#allocation3], 0 }
   0xc   :  { %16 = vsyncpa [#allocation3 + $0x1], 0 }
   0xd   :  { %17 = vsyncpa [#allocation6], 0 }
   0xe   :  { %19 = vsyncpa [#allocation6 + $0x1], 0 }
   0xf   :  { %20 = vsyncpa [#allocation9], 0 }
  0x10   :  { %21 = vsyncpa [#allocation12], 0 }
  0x11   :  { %22 = vsyncpa [#allocation4], 0 }
  0x12   :  { %24 = vsyncpa [#allocation4 + $0x1], 0  ;;  %s4138_s30 = smov 0   ;;  %s4140_s10 = smov 0  }
  0x13   :  { %s4142_s11 = smov 0   ;;  %s4144_s12 = smov 0  }
  0x14   :  { %s4146_s13 = smov 0   ;;  %s4148_s14 = smov 0  }
  0x15   :  { %s4150_s15 = smov 0   ;;  %s4152_s16 = smov 0  }
  0x16   :  { %s4154_s17 = smov 0   ;;  %s4156_s18 = smov 0  }
  0x17   :  { %s4158_s19 = smov 0   ;;  %s4160_s20 = smov 0  }
  0x18   :  { %s4162_s21 = smov 0   ;;  %s4164_s22 = smov 0  }
  0x19 LB: > { %5142 = sst [smem:[#allocation20_spill]] %s4021_s30  ;;  %s4209_s23 = sadd.s32 4294967295, %s4073_s22   ;;  %s4073_s22 = sphi %s4164_s22, %s30_s22   ;;  %s4069_s21 = sphi %s4162_s21, %s5224_s21   ;;  %s4065_s20 = sphi %s4160_s20, %s5232_s20   ;;  %s4061_s19 = sphi %s4158_s19, %s5222_s19   ;;  %s4057_s18 = sphi %s4156_s18, %s5221_s18   ;;  %s4053_s17 = sphi %s4154_s17, %s5231_s17   ;;  %s4049_s16 = sphi %s4152_s16, %s5230_s16   ;;  %s4045_s15 = sphi %s4150_s15, %s5229_s15   ;;  %s4041_s14 = sphi %s4148_s14, %s5228_s14   ;;  %s4037_s13 = sphi %s4146_s13, %s5227_s13   ;;  %s4033_s12 = sphi %s4144_s12, %s5218_s12   ;;  %s4029_s11 = sphi %s4142_s11, %s5226_s11   ;;  %s4025_s10 = sphi %s4140_s10, %s5217_s10   ;;  %s4021_s30 = sphi %s4138_s30, %s5225_s30  }
  0x1a   : > { %5143 = sst [smem:[#allocation21_spill]] %s4025_s10  ;;  %p2736_p0 = scmp.ge.s32.totalorder %s4073_s22, 1 }
  0x1b   : > { %5144 = sst [smem:[#allocation22_spill]] %s4029_s11  ;;  %p5127_p1 = scmp.eq.s32.totalorder %s4209_s23, 0 }
  0x1c   : > { %5145 = sst [smem:[#allocation23_spill]] %s4037_s13  ;;  %p301_p3 = scmp.lt.s32.totalorder %s4073_s22, 5 }
  0x1d   : > { %5146 = sst [smem:[#allocation24_spill]] %s4057_s18  ;;  %s4075_s25 = smov [#allocation8]  }
  0x1e   : > { %5147 = sst [smem:[#allocation25_spill]] %s4061_s19  ;;  %p4215_p4 = pnand %p2736_p0, %p301_p3 }
  0x1f   : > { %5148 = sst [smem:[#allocation26_spill]] %s4065_s20  ;;  %s313_s26 = sshll.u32 %s4075_s25, 4  ;;  %s314_s26 = int_to_ptr.vmem [resolvable:$true] %s313_s26 }
  0x20   : > { %5149 = sst [smem:[#allocation27_spill]] %s4069_s21  ;;  %p3484_p5 = pneg %p4215_p4 }
  0x21   : > { %s5150_s24 = scalar_select %p4215_p4, 1, 0 }
  0x22   : > { %p4223_p6 = pnand %p3484_p5, %p5127_p1  ;;  %s3762_s28 = scalar_lea.vmem %s314_s26, 1024 }
  0x23   : > { %5151 = sst [smem:[#allocation28_spill]] %s5150_s24  ;;  %p3763_p8 = scmp.ne.s32.totalorder %s314_s26, %s3762_s28 }
  0x24   : > { %p3753_p7 = pneg %p4223_p6  ;;  %p3770_p11 = scmp.lt.s32.totalorder %s314_s26, %s314_s26 }
  0x25   : > { %p3771_p12 = scmp.lt.s32.totalorder %s3762_s28, %s3762_s28 }
  0x26   : > { %p3765_p9 = pnand %p3763_p8, %p3753_p7 }
  0x27   : > { %p3772_p13 = por %p3771_p12, %p3770_p11 }
  0x28   : > { %p3766_p10 = pneg %p3765_p9 }
  0x2a   : > { %p3773_p0 = pnand %p3772_p13, %p3766_p10 }
  0x2c   : > { %3776 = shalt.err (!%p3773_p0)
}
  0x2d   : > { %s5111_s29 = smov 64   ;;  %s5113_s25 = smov 4  }
  0x2e   : > { %s5153_s3 = sld [smem:[#allocation38_spill]]  ;;  %s39_s19 = sadd.s32 1, %s4065_s20 }
  0x2f   : > { %s42_s8 = sadd.s32 1, %s4069_s21  ;;  %p40_p3 = scmp.ge.s32.totalorder %s39_s19, 2 }
  0x30   : > { %p5128_p5 = scmp.eq.s32.totalorder %s4073_s22, 0  ;;  %s2730_s6 = sshll.u32 %s4065_s20, 3 }
  0x31   : > { %s87_s18 = sadd.s32 1, %s4041_s14  ;;  %s5234_s19 = smov (%p40_p3, %s39_s19), 0 }
  0x32   : > { %5154 = sst [smem:[#allocation29_spill]] %s5234_s19  ;;  %s5236_s8 = smov (!%p40_p3, %s42_s8), %s4069_s21 }
  0x33   : > { %s47_s4 = ssub.s32 %s4065_s20, %s5234_s19  ;;  %s2731_s24 = sadd.s32 4294967295, %s2730_s6 }
  0x34   : > { %3487 = dma.hbm_to_vmem [thread:$0]  (!%p4223_p6), %s5153_s3, 1024, %s314_s26, [#allocation9], %s5111_s29, %s5111_s29, %s5113_s25  }
  0x35   : > { %p44_p8 = scmp.ge.s32.totalorder %s5236_s8, 2  ;;  %p76_p9 = scmp.gt.s32.totalorder %s2731_s24, 0 }
  0x36   : > { %s2732_s9 = sshll.u32 %s5234_s19, 3  ;;  %p94_p10 = scmp.ne.s32.totalorder %s4041_s14, %s4037_s13 }
  0x37   : > { %s5238_s8 = smov (%p44_p8, %s5236_s8), 0  ;;  %s5240_s24 = smov (!%p76_p9, %s2731_s24), 0 }
  0x38   : > { %5155 = sst [smem:[#allocation30_spill]] %s5238_s8  ;;  %s4257_s26 = ssub.s32 %s4069_s21, %s5238_s8 }
  0x39   : > { %5156 = sst [smem:[#allocation31_spill]] %s4257_s26  ;;  %s2733_s28 = sadd.s32 4294967295, %s2732_s9 }
  0x3a   : > { %s4260_s29 = sor.u32 %s47_s4, %s4257_s26  ;;  %p80_p11 = scmp.gt.s32.totalorder %s2733_s28, 0 }
  0x3b   : > { %p49_p12 = scmp.eq.s32.totalorder %s4260_s29, 0  ;;  %p4265_p13 = por %p94_p10, %p5128_p5 }
  0x3c   : > { %s5242_s28 = smov (!%p80_p11, %s2733_s28), 0  ;;  %p100_p0 = scmp.ne.s32.totalorder %s4037_s13, %s4033_s12 }
  0x3d   : > { %s4271_s3 = sadd.s32 8, %s2730_s6  ;;  %s83_s8 = ssub.s32 %s5240_s24, %s5242_s28 }
  0x3e   : > { %5158 = sst [smem:[#allocation32_spill]] %s4271_s3  ;;  %s84_s4 = sor.u32 %s83_s8, %s4257_s26 }
  0x3f   : > { %p4277_p8 = por %p100_p0, %p5127_p1  ;;  %p85_p9 = scmp.eq.s32.totalorder %s84_s4, 0 }
  0x40   : > { %s4281_s2 = sadd.s32 8, %s2732_s9  ;;  %p5126_p11 = scmp.lt.s32.totalorder %s4073_s22, 4 }
  0x41   : > { %s5159_s19 = scalar_select %p4277_p8, 1, 0 }
  0x42   : > { %s4286_s12 = scalar_select %p85_p9, %s4041_s14, %s87_s18  }
  0x43   : > { %5160 = sst [smem:[#allocation33_spill]] %s5159_s19  ;;  %s4289_s6 = sshll.u32 %s4069_s21, 5 }
  0x44   : > { %5161 = sst [smem:[#allocation34_spill]] %s4286_s12  ;;  %s386_s28 = sand.u32 1, %s4073_s22  }
  0x45   : > { %s388_s8 = sand.u32 1, %s4041_s14   ;;  %s2749_s26 = sshll.u32 %s5240_s24, 1 }
  0x46   : > { %s2746_s13 = sshll.u32 %s388_s8, 3  ;;  %s400_s30 = sadd.s32 %s2749_s26, %s4289_s6 }
  0x47   : > { %s2751_s10 = sshll.u32 %s400_s30, 6  ;;  %s390_s19 = scalar_lea.vmem [#allocation5], %s2746_s13 }
  0x48   : > { %s403_s4 = sshll.u32 %s390_s19, 4  ;;  %s5162_s1 = sld [smem:[#allocation36_spill]]  ;;  %s404_s4 = int_to_ptr.vmem [resolvable:$true] %s403_s4 }
  0x49   : > { %p4301_p0 = pnand %p5126_p11, %p4265_p13  ;;  %s4078_s21 = smov [#allocation10]  }
  0x4a   : > { %s329_s12 = sshll.u32 %s4078_s21, 4  ;;  %s4307_s24 = scalar_lea.sflag [#allocation6], %s386_s28  ;;  %s4305_s12 = int_to_ptr.vmem [resolvable:$true] %s329_s12 }
  0x4b   : > { %p3779_p9 = pneg %p4301_p0  ;;  %s3790_s30 = scalar_lea.vmem %s404_s4, 128 }
  0x4c   : > { %p3791_p10 = scmp.ne.s32.totalorder %s404_s4, %s3790_s30  ;;  %s4079_s3 = smov [#allocation5]  }
  0x4e   : > { %s402_s9 = scalar_lea.hbm %s5162_s1, %s2751_s10  ;;  %p3793_p3 = pnand %p3791_p10, %p3779_p9 }
  0x4f   : > { %s3795_s10 = sshll.u32 %s4079_s3, 4  ;;  %s3796_s10 = int_to_ptr.vmem [resolvable:$false] %s3795_s10 }
  0x50   : > { %p3794_p2 = pneg %p3793_p3  ;;  %s3797_s11 = scalar_lea.vmem %s3796_s10, 256 }
  0x51   : > { %p3798_p13 = scmp.lt.s32.totalorder %s404_s4, %s3796_s10  ;;  %p3799_p11 = scmp.lt.s32.totalorder %s3797_s11, %s3790_s30 }
  0x53   : > { %p3800_p1 = por %p3799_p11, %p3798_p13 }
  0x55   : > { %p3801_p5 = pnand %p3800_p1, %p3794_p2 }
  0x57   : > { %3804 = shalt.err (!%p3801_p5)
}
  0x58   : > { %s5164_s13 = smov 4   ;;  %s5165_s19 = smov 64  }
  0x59   : > { %3500 = dma.hbm_to_vmem [thread:$0]  (!%p4301_p0), %s402_s9, 128, %s404_s4, %s4307_s24, %s5165_s19, %s5165_s19, %s5164_s13  }
  0x5a   : > { %s3816_s21 = scalar_lea.vmem %s4305_s12, 9216  ;;  %p3824_p1 = scmp.lt.s32.totalorder %s4305_s12, %s4305_s12 }
  0x5b   : > { %p3817_p3 = scmp.ne.s32.totalorder %s4305_s12, %s3816_s21  ;;  %p3825_p2 = scmp.lt.s32.totalorder %s3816_s21, %s3816_s21 }
  0x5d   : > { %p3819_p10 = pnand %p3817_p3, %p3753_p7  ;;  %p3826_p5 = por %p3825_p2, %p3824_p1 }
  0x5f   : > { %p3820_p9 = pneg %p3819_p10 }
  0x61   : > { %p3827_p11 = pnand %p3826_p5, %p3820_p9 }
  0x63   : > { %3830 = shalt.err (!%p3827_p11)
}
  0x64   : > { %s5166_s5 = sld [smem:[#allocation40_spill]]  ;;  %s4080_s28 = smov [#allocation11]  }
  0x65   : > { %s345_s8 = sshll.u32 %s4080_s28, 4  ;;  %s346_s8 = int_to_ptr.vmem [resolvable:$true] %s345_s8 }
  0x66   : > { %s3842_s4 = scalar_lea.vmem %s346_s8, 1024  ;;  %p3850_p10 = scmp.lt.s32.totalorder %s346_s8, %s346_s8 }
  0x67   : > { %p3843_p0 = scmp.ne.s32.totalorder %s346_s8, %s3842_s4  ;;  %p3851_p9 = scmp.lt.s32.totalorder %s3842_s4, %s3842_s4 }
  0x69   : > { %p3845_p13 = pnand %p3843_p0, %p3753_p7  ;;  %p3852_p1 = por %p3851_p9, %p3850_p10 }
  0x6a   : > { %3490 = dma.hbm_to_vmem [thread:$0]  (!%p4223_p6), %s5166_s5, 9216, %s4305_s12, [#allocation9], %s5165_s19, %s5165_s19, %s5164_s13  }
  0x6b   : > { %p3846_p3 = pneg %p3845_p13 }
  0x6d   : > { %p3853_p2 = pnand %p3852_p1, %p3846_p3 }
  0x6f   : > { %3856 = shalt.err (!%p3853_p2)
}
  0x70   : > { %s5167_s7 = sld [smem:[#allocation42_spill]]  ;;  %s2729_s27 = sadd.s32 4294967294, %s4073_s22  }
  0x71   : > { %s51_s18 = sadd.s32 1, %s4053_s17  ;;  %p58_p7 = scmp.ne.s32.totalorder %s4053_s17, %s4049_s16 }
  0x72   : > { %s4349_s30 = scalar_select %p49_p12, %s4053_s17, %s51_s18  }
  0x73   : > { %p64_p5 = scmp.ne.s32.totalorder %s4049_s16, %s4045_s15  ;;  %p294_p11 = scmp.eq.s32.totalorder %s2729_s27, 3 }
  0x74   : > { %s362_s3 = sand.u32 1, %s4053_s17   ;;  %p5168_p0 = scmp.eq.s32.totalorder %s4073_s22, 0 }
  0x75   : > { %p5169_p3 = scmp.eq.s32.totalorder %s4209_s23, 0  ;;  %p5171_p9 = scmp.eq.s32.totalorder %s4209_s23, 3 }
  0x76   : > { %3493 = dma.hbm_to_vmem [thread:$0]  (!%p4223_p6), %s5167_s7, 1024, %s346_s8, [#allocation12], %s5165_s19, %s5165_s19, %s5164_s13  }
  0x77   : > { %p60_p13 = por %p5168_p0, %p58_p7  ;;  %p4360_p10 = por %p5169_p3, %p64_p5 }
  0x78   : > { %p4366_p1 = por %p5171_p9, %p58_p7  ;;  %p4370_p6 = por %p294_p11, %p64_p5 }
  0x79   : > { %s2741_s21 = sshll.u32 %s362_s3, 6  ;;  %s2893_s25 = sshll.u32 %s4065_s20, 4 }
  0x7a   : > { %s5172_s11 = scalar_select %p4366_p1, 1, 0 }
  0x7b   : > { %s5173_s29 = scalar_select %p4370_p6, 1, 0 }
  0x7c   : > { %s373_s26 = sadd.s32 %s2893_s25, %s4289_s6  ;;  %s366_s28 = scalar_lea.vmem [#allocation2], %s2741_s21 }
  0x7d   : > { %s376_s8 = sshll.u32 %s366_s28, 4  ;;  %s2745_s4 = sshll.u32 %s373_s26, 6  ;;  %s377_s8 = int_to_ptr.vmem [resolvable:$true] %s376_s8 }
  0x7e   : > { %s5174_s0 = sld [smem:[#allocation35_spill]]  ;;  %p5175_p12 = scmp.lt.s32.totalorder %s4073_s22, 4 }
  0x7f   : > { %s363_s1 = scalar_lea.sflag [#allocation3], %s362_s3  ;;  %s3870_s5 = scalar_lea.vmem %s377_s8, 1024 }
  0x80   : > { %p4381_p2 = pnand %p5175_p12, %p60_p13  ;;  %p3871_p5 = scmp.ne.s32.totalorder %s377_s8, %s3870_s5 }
  0x81   : > { %s4081_s21 = smov [#allocation2]  }
  0x82   : > { %p3859_p7 = pneg %p4381_p2  ;;  %s3875_s25 = sshll.u32 %s4081_s21, 4  ;;  %s3876_s25 = int_to_ptr.vmem [resolvable:$false] %s3875_s25 }
  0x83   : > { %s3877_s26 = scalar_lea.vmem %s3876_s25, 2048  ;;  %p3878_p3 = scmp.lt.s32.totalorder %s377_s8, %s3876_s25 }
  0x84   : > { %s375_s27 = scalar_lea.hbm %s5174_s0, %s2745_s4  ;;  %p3873_p11 = pnand %p3871_p5, %p3859_p7 }
  0x85   : > { %p3879_p9 = scmp.lt.s32.totalorder %s3877_s26, %s3870_s5 }
  0x86   : > { %p3874_p0 = pneg %p3873_p11 }
  0x87   : > { %p3880_p6 = por %p3879_p9, %p3878_p3 }
  0x89   : > { %p3881_p1 = pnand %p3880_p6, %p3874_p0 }
  0x8b   : > { %3884 = shalt.err (!%p3881_p1)
}
  0x8c   : > { %s5177_s3 = sld [smem:[#allocation22_spill]]  ;;  %p5183_p1 = scmp.lt.s32.totalorder %s4281_s2, 15 }
  0x8d   : > { %s5178_s28 = sld [smem:[#allocation32_spill]]  ;;  %p5184_p7 = scmp.eq.s32.totalorder %s4073_s22, 0 }
  0x8e   : > { %s5179_s4 = sld [smem:[#allocation21_spill]]  ;;  %s5246_s2 = smov (!%p5183_p1, %s4281_s2), 15 }
  0x8f   : > { %s5180_s12 = sld [smem:[#allocation20_spill]]  ;;  %p5185_p0 = scmp.eq.s32.totalorder %s4209_s23, 0 }
  0x90   : > { %s5181_s9 = sld [smem:[#allocation31_spill]] }
  0x91   : > { %3497 = dma.hbm_to_vmem [thread:$0]  (!%p4381_p2), %s375_s27, 1024, %s377_s8, %s363_s1, %s5165_s19, %s5165_s19, %s5164_s13  }
  0x92   : > { %s123_s5 = sadd.s32 1, %s5177_s3  ;;  %s415_s21 = sand.u32 1, %s5177_s3  }
  0x93   : > { %p5182_p13 = scmp.lt.s32.totalorder %s5178_s28, 15  ;;  %s2752_s1 = sshll.u32 %s415_s21, 3 }
  0x94   : > { %p130_p6 = scmp.ne.s32.totalorder %s5177_s3, %s5179_s4  ;;  %s417_s7 = scalar_lea.vmem [#allocation7], %s2752_s1 }
  0x95   : > { %s5244_s28 = smov (!%p5182_p13, %s5178_s28), 15  ;;  %p136_p12 = scmp.ne.s32.totalorder %s5179_s4, %s5180_s12 }
  0x96   : > { %s119_s18 = ssub.s32 %s5244_s28, %s5246_s2  ;;  %p132_p5 = por %p130_p6, %p5184_p7 }
  0x97   : > { %s120_s25 = sor.u32 %s119_s18, %s5181_s9  ;;  %p4409_p3 = por %p136_p12, %p5185_p0 }
  0x98   : > { %p121_p11 = scmp.eq.s32.totalorder %s120_s25, 0  ;;  %s2754_s8 = sshll.u32 %s5244_s28, 1 }
  0x99   : > { %s5186_s26 = scalar_select %p4409_p3, 1, 0 }
  0x9a   : > { %s5248_s3 = smov (!%p121_p11, %s5177_s3), %s123_s5  ;;  %s427_s27 = sadd.s32 %s2754_s8, %s4289_s6 }
  0x9b   : > { %s2756_s0 = sshll.u32 %s427_s27, 6  ;;  %s430_s4 = sshll.u32 %s417_s7, 4  ;;  %s431_s4 = int_to_ptr.vmem [resolvable:$true] %s430_s4 }
  0x9c   : > { %s5187_s20 = sld [smem:[#allocation37_spill]]  ;;  %p5188_p2 = scmp.lt.s32.totalorder %s4073_s22, 4 }
  0x9d   : > { %s3898_s28 = scalar_lea.vmem %s431_s4, 128  ;;  %s4082_s6 = smov [#allocation7]  }
  0x9e   : > { %p4422_p9 = pnand %p5188_p2, %p132_p5  ;;  %p3899_p1 = scmp.ne.s32.totalorder %s431_s4, %s3898_s28 }
  0x9f   : > { %s3903_s5 = sshll.u32 %s4082_s6, 4  ;;  %s3904_s5 = int_to_ptr.vmem [resolvable:$false] %s3903_s5 }
  0xa0   : > { %p3887_p13 = pneg %p4422_p9  ;;  %s3905_s7 = scalar_lea.vmem %s3904_s5, 256 }
  0xa1   : > { %p3906_p7 = scmp.lt.s32.totalorder %s431_s4, %s3904_s5  ;;  %p3907_p11 = scmp.lt.s32.totalorder %s3905_s7, %s3898_s28 }
  0xa2   : > { %s429_s9 = scalar_lea.hbm %s5187_s20, %s2756_s0  ;;  %p3901_p6 = pnand %p3899_p1, %p3887_p13 }
  0xa3   : > { %p3908_p0 = por %p3907_p11, %p3906_p7 }
  0xa4   : > { %p3902_p12 = pneg %p3901_p6 }
  0xa6   : > { %p3909_p3 = pnand %p3908_p0, %p3902_p12 }
  0xa8   : > { %3912 = shalt.err (!%p3909_p3)
}
  0xa9   : > { %3503 = dma.hbm_to_vmem [thread:$0]  (!%p4422_p9), %s429_s9, 128, %s431_s4, %s4307_s24, %s5165_s19, %s5165_s19, %s5164_s13  }
  0xaa   : > { %442 = sbr.rel (%p4215_p4) target bundleno = 1031 (0x407), region = 56  ;;  %s4437_s20 = sand.u32 (!%p4215_p4), 1, %s4049_s16  }
  0xab   : > { %s2758_s21 = sshll.u32 (!%p4215_p4), %s4437_s20, 6  ;;  %s445_s25 = scalar_lea.sflag (!%p4215_p4), [#allocation3], %s4437_s20 }
  0xac   : > { %s4443_s1 = scalar_lea.vmem (!%p4215_p4), [#allocation2], %s2758_s21 }
  0xaf   : > { %3996 = dma.done.wait (%p4360_p10), %s445_s25, 1024  }
  0xb0   : > { %3998 = vsyncadd (%p4360_p10), %s445_s25, 4294966272  ;;  %s5191_s24 = sld [smem:[#allocation23_spill]]  ;;  %s453_s19 = sand.u32 1, %s4209_s23  }
  0xb1   : > { %s454_s4 = scalar_lea.sflag [#allocation6], %s453_s19 }
  0xb6   : > { %s455_s8 = sand.u32 1, %s5191_s24  }
  0xb7   : > { %s4451_s27 = sshll.u32 %s455_s8, 3 }
  0xb8   : > { %s457_s12 = scalar_lea.vmem [#allocation5], %s4451_s27 }
  0xb9   : > { %4000 = dma.done.wait (%p4277_p8), %s454_s4, 128  }
  0xba   : > { %4002 = vsyncadd (%p4277_p8), %s454_s4, 4294967168  ;;  %s5193_s2 = sld [smem:[#allocation21_spill]]  ;;  %p5194_p4 = scmp.ne.s32.totalorder %s5186_s26, 0 }
  0xc0   : > { %s464_s9 = sand.u32 1, %s5193_s2  }
  0xc1   : > { %s4459_s10 = sshll.u32 %s464_s9, 3 }
  0xc2   : > { %s466_s18 = scalar_lea.vmem [#allocation7], %s4459_s10 }
  0xc3   : > { %4004 = dma.done.wait (%p5194_p4), %s454_s4, 128  }
  0xc4   : > { %4006 = vsyncadd (%p5194_p4), %s454_s4, 4294967168  ;;  %p5195_p10 = scmp.eq.s32.totalorder %s4209_s23, 0 }
  0xc6   : > { %4008 = dma.done.wait (%p5195_p10), [#allocation9], 10240   ;;  %p5196_p5 = pmov %p5195_p10 }
  0xc8   : > { %4010 = vsyncadd (%p5196_p5), [#allocation9], 4294957056  ;;  %p5197_p8 = pmov %p5196_p5 }
  0xc9   : > { %p5198_p3 = pmov %p5196_p5 }
  0xca   : > { %4012 = dma.done.wait (%p5197_p8), [#allocation12], 1024  }
  0xcb   : > { %4014 = vsyncadd (%p5198_p3), [#allocation12], 4294966272  ;;  %v4083_v0 = vmov 0.0   ;;  %vm4084_vm0 = vmmov 0   ;;  %v3637_v1 = vld [vmem:[#allocation8 + $0x38] sm:$0xff]   ;;  %v3638_v2 = vld [vmem:[#allocation8 + $0x30] sm:$0xff]  }
  0xcc   : > { %3280 = vmatprep.subr.bf16.mxu1 %v4083_v0  ;;  %3296 = vmatprep.mubr.msk.bf16.mxu1 %vm4084_vm0, %v4083_v0  ;;  %v4478_v3 = vld [vmem:[#allocation8 + $0x28] sm:$0xff]   ;;  %v3640_v4 = vld [vmem:[#allocation8 + $0x20] sm:$0xff]   ;;  %v3641_v6 = vld [vmem:[#allocation8 + $0x18] sm:$0xff]   ;;  %s5199_s28 = sld [smem:[#allocation39_spill]]  ;;  %vm984_vm1 = vcmask 1040384   ;;  %vm1027_vm3 = vcmask 1047552  }
  0xcd   : > { %3248 = vmatprep.subr.bf16.mxu0 %v3637_v1  ;;  %3281 = vmatpush3.bf16.msra.mxu1 %v3637_v1  ;;  %v551_v5 = vld [vmem:[%s4443_s1] sm:$0xff]   ;;  %v3642_v7 = vld [vmem:[#allocation8 + $0x10] sm:$0xff]   ;;  %v3643_v8 = vld [vmem:[#allocation8 + $0x8] sm:$0xff]   ;;  %vm985_vm2 = vsmask.f32 256  ;;  %s5200_s6 = sld [smem:[#allocation24_spill]] }
  0xce   : > { %3249 = vmatpush3.bf16.msra.mxu0 %v3637_v1  ;;  %3282 = vmatprep.subr.bf16.mxu1 %v4083_v0  ;;  %v3644_v9 = vld [vmem:[#allocation8] sm:$0xff]   ;;  %v553_v10 = vld [vmem:[%s4443_s1 + $0x8] sm:$0xff]   ;;  %v3655_v11 = vld [vmem:[#allocation10 + $0x138] sm:$0xff]   ;;  %vm1028_vm4 = vsmask.f32 7424  ;;  %s5209_s24 = sld [smem:[#allocation41_spill]] }
  0xcf   : > { %3250 = vmatprep.subr.bf16.mxu0 %v3638_v2  ;;  %3264 = vmatprep.mubr.bf16.mxu0 %v551_v5  ;;  %v555_v12 = vld [vmem:[%s4443_s1 + $0x10] sm:$0xff]   ;;  %v3653_v13 = vld [vmem:[%s457_s12] sm:$0xff]   ;;  %v3656_v14 = vld [vmem:[#allocation10 + $0xf8] sm:$0xff]   ;;  %s5210_s8 = sld [smem:[#allocation43_spill]]  ;;  %s4985_s27 = scalar_lea.vmem [#allocation13], %s2758_s21 }
  0xd0   : > { %v3658_v15 = vld [vmem:[#allocation10 + $0x130] sm:$0xff]   ;;  %v557_v17 = vld [vmem:[%s4443_s1 + $0x18] sm:$0xff]   ;;  %v3661_v18 = vld [vmem:[#allocation10 + $0x128] sm:$0xff]   ;;  %s5211_s21 = sld [smem:[#allocation25_spill]]  ;;  %s2560_s10 = sshll.u32 %s4985_s27, 4  ;;  %s5019_s10 = int_to_ptr.vmem [resolvable:$true] %s2560_s10 }
  0xd1   : > { %3283 = vmatpush3.bf16.msra.mxu1 %v3638_v2  ;;  %v3659_v16 = vld [vmem:[#allocation10 + $0xf0] sm:$0xff]   ;;  %v559_v19 = vld [vmem:[%s4443_s1 + $0x20] sm:$0xff]   ;;  %v3662_v20 = vld [vmem:[#allocation10 + $0xe8] sm:$0xff]   ;;  %p5213_p1 = scmp.ne.s32.totalorder %s5172_s11, 0 }
  0xd2   : > { %3251 = vmatpush3.bf16.msra.mxu0 %v3638_v2  ;;  %3284 = vmatprep.subr.bf16.mxu1 %v4083_v0  ;;  %v3664_v21 = vld [vmem:[#allocation10 + $0x120] sm:$0xff]   ;;  %v561_v22 = vld [vmem:[%s4443_s1 + $0x28] sm:$0xff]   ;;  %v563_v23 = vld [vmem:[%s4443_s1 + $0x30] sm:$0xff]  }
  0xd3   : > { %3252 = vmatprep.subr.bf16.mxu0 %v4478_v3  ;;  %v565_v24 = vld [vmem:[%s4443_s1 + $0x38] sm:$0xff]   ;;  %v3660_v27 = vld [vmem:[#allocation10 + $0x170] sm:$0xff]   ;;  %v3663_v28 = vld [vmem:[#allocation10 + $0x168] sm:$0xff]   ;;  %p894_p2 = scmp.eq.s32.totalorder %s5200_s6, 0  ;;  %p899_p9 = scmp.eq.s32.totalorder %s5200_s6, 1 }
  0xd4   : > { %v3657_v25 = vld [vmem:[#allocation10 + $0x178] sm:$0xff]   ;;  %v3665_v29 = vld [vmem:[#allocation10 + $0xe0] sm:$0xff]   ;;  %v3670_v34 = vld [vmem:[#allocation10 + $0x110] sm:$0xff]   ;;  %s2910_s4 = sshll.u32 %s5200_s6, 4  ;;  %s3913_s6 = scalar_lea.vmem %s5019_s10, 1024 }
  0xd5   : > { %3285 = vmatpush3.bf16.msra.mxu1 %v4478_v3  ;;  %v3654_v26 = vld [vmem:[%s466_s18] sm:$0xff]   ;;  %v3666_v30 = vld [vmem:[#allocation10 + $0x160] sm:$0xff]   ;;  %v3673_v37 = vld [vmem:[#allocation10 + $0x108] sm:$0xff]   ;;  %s4587_s5 = scalar_select %p894_p2, 1, 0 }
  0xd6   : > { %3253 = vmatpush3.bf16.msra.mxu0 %v4478_v3  ;;  %3286 = vmatprep.subr.bf16.mxu1 %v4083_v0  ;;  %v3667_v31 = vld [vmem:[#allocation10 + $0x118] sm:$0xff]   ;;  %v3671_v35 = vld [vmem:[#allocation10 + $0xd0] sm:$0xff]   ;;  %v3674_v38 = vld [vmem:[#allocation10 + $0xc8] sm:$0xff]   ;;  %s4656_s7 = scalar_select %p899_p9, 1, 0 }
  0xd7   : > { %3254 = vmatprep.subr.bf16.mxu0 %v3640_v4  ;;  %v3668_v32 = vld [vmem:[#allocation10 + $0xd8] sm:$0xff]   ;;  %v3672_v36 = vld [vmem:[#allocation10 + $0x150] sm:$0xff]   ;;  %v3675_v39 = vld [vmem:[#allocation10 + $0x148] sm:$0xff]   ;;  %s2889_s12 = sshll.u32 %s5211_s21, 5  ;;  %p3914_p13 = scmp.ne.s32.totalorder %s5019_s10, %s3913_s6 }
  0xd8   : > { %v3669_v33 = vld [vmem:[#allocation10 + $0x158] sm:$0xff]   ;;  %v3676_v40 = vld [vmem:[#allocation10 + $0x100] sm:$0xff]   ;;  %vm4544_vm5 = vmand %vm984_vm1, %vm985_vm2  ;;  %s2557_s2 = sadd.s32 %s2910_s4, %s2889_s12 }
  0xd9   : > { %3287 = vmatpush3.bf16.msra.mxu1 %v3640_v4  ;;  %v3677_v41 = vld [vmem:[#allocation10 + $0xc0] sm:$0xff]   ;;  %v3680_v43 = vld [vmem:[#allocation10 + $0x78] sm:$0xff]   ;;  %vm4550_vm6 = vmand %vm1027_vm3, %vm1028_vm4  ;;  %s2890_s9 = sshll.u32 %s2557_s2, 6  ;;  %p3915_p6 = pnand %p3914_p13, %p5213_p1 }
  0xda   : > { %3255 = vmatpush3.bf16.msra.mxu0 %v3640_v4  ;;  %3288 = vmatprep.subr.bf16.mxu1 %v4083_v0  ;;  %v3678_v42 = vld [vmem:[#allocation10 + $0x140] sm:$0xff]   ;;  %v4512_v44 = vld [vmem:[#allocation10 + $0xb8] sm:$0xff]  }
  0xdb   : > { %3256 = vmatprep.subr.bf16.mxu0 %v3641_v6  ;;  %v4520_v47 = vld [vmem:[%s5199_s28] ss:$0 sm:$0xff]  ;;  %s2544_s28 = scalar_lea.sflag [#allocation4], %s4437_s20  ;;  %p3916_p12 = pneg %p3915_p6 }
  0xdd   : > { %3289 = vmatpush3.bf16.msra.mxu1 %v3641_v6 }
  0xde   : > { %3257 = vmatpush3.bf16.msra.mxu0 %v3641_v6  ;;  %3290 = vmatprep.subr.bf16.mxu1 %v4083_v0 }
  0xdf   : > { %3258 = vmatprep.subr.bf16.mxu0 %v3642_v7 }
  0xe1   : > { %3291 = vmatpush3.bf16.msra.mxu1 %v3642_v7 }
  0xe2   : > { %3259 = vmatpush3.bf16.msra.mxu0 %v3642_v7  ;;  %3292 = vmatprep.subr.bf16.mxu1 %v4083_v0 }
  0xe3   : > { %3260 = vmatprep.subr.bf16.mxu0 %v3643_v8 }
  0xe5   : > { %3293 = vmatpush3.bf16.msra.mxu1 %v3643_v8 }
  0xe6   : > { %3261 = vmatpush3.bf16.msra.mxu0 %v3643_v8  ;;  %3294 = vmatprep.subr.bf16.mxu1 %v4083_v0 }
  0xe7   : > { %3262 = vmatprep.subr.bf16.mxu0 %v3644_v9 }
  0xe9   : > { %3295 = vmatpush3.bf16.msra.mxu1 %v3644_v9 }
  0xea   : > { %3263 = vmatpush3.bf16.msra.mxu0 %v3644_v9  ;;  %2992 = vmatprep.subr.bf16.mxu1 %v3655_v11 }
  0xeb   : > { %3300 = vmatprep.subr.bf16.mxu0 %v4083_v0 }
  0xec   : > { %3297 = vmatmul.mubr.bf16.vlgmr.msra.gmra.mxu1 %v3653_v13 }
  0xed   : > { %3265 = vmatmul.mubr.bf16.vlgmr.msra.gmra.mxu0 %v553_v10  ;;  %2993 = vmatpush3.bf16.msra.mxu1 %v3656_v14 }
  0xee   : > { %3268 = vmatprep.mubr.bf16.mxu0 %v555_v12  ;;  %3301 = vmatpush3.bf16.msra.mxu0 %v3637_v1 }
  0xef   : > { %3302 = vmatprep.subr.bf16.mxu0 %v4083_v0  ;;  %2994 = vmatprep.subr.bf16.mxu1 %v3658_v15 }
  0xf1   : > { %2995 = vmatpush3.bf16.msra.mxu1 %v3659_v16 }
  0xf2   : > { %3303 = vmatpush3.bf16.msra.mxu0 %v3638_v2  ;;  %2996 = vmatprep.subr.bf16.mxu1 %v3661_v18 }
  0xf3   : > { %3304 = vmatprep.subr.bf16.mxu0 %v4083_v0 }
  0xf5   : > { %3269 = vmatmul.mubr.bf16.gmra.mxu0 %v557_v17  ;;  %2997 = vmatpush3.bf16.msra.mxu1 %v3662_v20 }
  0xf6   : > { %3272 = vmatprep.mubr.bf16.mxu0 %v559_v19  ;;  %3305 = vmatpush3.bf16.msra.mxu0 %v4478_v3 }
  0xf7   : > { %3306 = vmatprep.subr.bf16.mxu0 %v4083_v0  ;;  %2998 = vmatprep.subr.bf16.mxu1 %v3664_v21 }
  0xf9   : > { %2999 = vmatpush3.bf16.msra.mxu1 %v3665_v29 }
  0xfa   : > { %3307 = vmatpush3.bf16.msra.mxu0 %v3640_v4  ;;  %3000 = vmatprep.subr.bf16.mxu1 %v3667_v31 }
  0xfb   : > { %3308 = vmatprep.subr.bf16.mxu0 %v4083_v0 }
  0xfd   : > { %3273 = vmatmul.mubr.bf16.gmra.mxu0 %v561_v22  ;;  %3001 = vmatpush3.bf16.msra.mxu1 %v3668_v32  ;;  %v3681_v32 = vld [vmem:[#allocation10 + $0x38] sm:$0xff]  }
  0xfe   : > { %3276 = vmatprep.mubr.bf16.mxu0 %v563_v23  ;;  %3309 = vmatpush3.bf16.msra.mxu0 %v3641_v6 }
  0xff   : > { %3310 = vmatprep.subr.bf16.mxu0 %v4083_v0  ;;  %3002 = vmatprep.subr.bf16.mxu1 %v3670_v34 }
 0x101   : > { %3003 = vmatpush3.bf16.msra.mxu1 %v3671_v35 }
 0x102   : > { %3311 = vmatpush3.bf16.msra.mxu0 %v3642_v7  ;;  %3004 = vmatprep.subr.bf16.mxu1 %v3673_v37 }
 0x103   : > { %3312 = vmatprep.subr.bf16.mxu0 %v4083_v0 }
 0x105   : > { %3277 = vmatmul.mubr.bf16.gmra.mxu0 %v565_v24  ;;  %3005 = vmatpush3.bf16.msra.mxu1 %v3674_v38  ;;  %v3731_v24 = vld [vmem:[#allocation11 + $0x18] sm:$0xff]  }
 0x106   : > { %3313 = vmatpush3.bf16.msra.mxu0 %v3643_v8  ;;  %3316 = vmatprep.mubr.msk.bf16.mxu0 %vm4084_vm0, %v4083_v0 }
 0x107   : > { %3314 = vmatprep.subr.bf16.mxu0 %v4083_v0  ;;  %3006 = vmatprep.subr.bf16.mxu1 %v3676_v40 }
 0x109   : > { %3007 = vmatpush3.bf16.msra.mxu1 %v3677_v41 }
 0x10a   : > { %3315 = vmatpush3.bf16.msra.mxu0 %v3644_v9  ;;  %3352 = vmatprep.subr.bf16.mxu1 %v4512_v44 }
 0x10b   : > { %3320 = vmatprep.subr.bf16.mxu0 %v3657_v25 }
 0x10d   : > { %3317 = vmatmul.mubr.bf16.vlgmr.msra.gmra.mxu0 %v3654_v26 }
 0x10e   : > { %3321 = vmatpush3.bf16.msra.mxu0 %v3657_v25 }
 0x10f   : > { %3322 = vmatprep.subr.bf16.mxu0 %v3660_v27 }
 0x112   : > { %3323 = vmatpush3.bf16.msra.mxu0 %v3660_v27  ;;  %v3729_v27 = vld [vmem:[#allocation11 + $0x28] sm:$0xff]  }
 0x113   : > { %3324 = vmatprep.subr.bf16.mxu0 %v3663_v28 }
 0x116   : > { %3325 = vmatpush3.bf16.msra.mxu0 %v3663_v28 }
 0x117   : > { %3326 = vmatprep.subr.bf16.mxu0 %v3666_v30 }
 0x11a   : > { %3327 = vmatpush3.bf16.msra.mxu0 %v3666_v30 }
 0x11b   : > { %3328 = vmatprep.subr.bf16.mxu0 %v3669_v33 }
 0x11e   : > { %3329 = vmatpush3.bf16.msra.mxu0 %v3669_v33  ;;  %v3684_v33 = vld [vmem:[#allocation10 + $0xb0] sm:$0xff]  }
 0x11f   : > { %3330 = vmatprep.subr.bf16.mxu0 %v3672_v36 }
 0x122   : > { %3331 = vmatpush3.bf16.msra.mxu0 %v3672_v36  ;;  %v3682_v36 = vld [vmem:[#allocation10 + $0x70] sm:$0xff]  }
 0x123   : > { %3332 = vmatprep.subr.bf16.mxu0 %v3675_v39 }
 0x126   : > { %3333 = vmatpush3.bf16.msra.mxu0 %v3675_v39 }
 0x127   : > { %3334 = vmatprep.subr.bf16.mxu0 %v3678_v42 }
 0x12a   : > { %3335 = vmatpush3.bf16.msra.mxu0 %v3678_v42 }
 0x12b   : > { %3072 = vmatprep.subr.bf16.mxu0 %v3680_v43 }
 0x1ac   : > { %v4515_v45 = vpop.f32.mrf.mxu1 }
 0x1ad   : > { %v3266_v46 = vpop.f32.mrf.mxu0  ;;  %v833_v38 = vadd.f32 %v4520_v47, %v4515_v45 }
 0x1ae   : > { %v3298_v48 = vpop.f32.mrf.mxu1  ;;  %v712_v50 = vadd.f32 %v3266_v46, %v4520_v47 }
 0x1af   : > { %v703_v49 = vpop.f32.mrf.mxu0 }
 0x1b0   : > { %v835_v51 = vpop.f32.mrf.mxu1  ;;  %v704_v53 = vadd.f32 %v4520_v47, %v703_v49  ;;  %v768_v57 = vmax.f32 %v712_v50, 0.0 }
 0x1b1   : > { %v3267_v52 = vpop.f32.mrf.mxu0  ;;  %v836_v39 = vadd.f32 %v4520_v47, %v835_v51 }
 0x1b2   : > { %v715_v54 = vadd.f32 %v3267_v52, %v4520_v47  ;;  %v3299_v55 = vpop.f32.mrf.mxu1  ;;  %v766_v61 = vmax.f32 %v704_v53, 0.0 }
 0x1b3   : > { %v706_v56 = vpop.f32.mrf.mxu0 }
 0x1b4   : > { %v769_v58 = vmax.f32 %v715_v54, 0.0  ;;  %v707_v59 = vadd.f32 %v4520_v47, %v706_v56  ;;  %v3683_v54 = vld [vmem:[#allocation10 + $0x30] sm:$0xff]  }
 0x1b5   : > { %v3270_v60 = vpop.f32.mrf.mxu0 }
 0x1b6   : > { %v4526_v62 = vpack.c.bf16 %v769_v58, %v768_v57  ;;  %v767_v63 = vmax.f32 %v707_v59, 0.0  ;;  %v728_v0 = vadd.f32 %v3270_v60, %v4520_v47  ;;  %v839_v58 = vmax.f32 %v833_v38, 0.0  ;;  %v3699_v38 = vld [vmem:[#allocation10 + $0x98] sm:$0xff]  }
 0x1b7   : > { %v719_v1 = vpop.f32.mrf.mxu0  ;;  %v840_v59 = vmax.f32 %v836_v39, 0.0 }
 0x1b8   : > { %v4529_v2 = vpack.c.bf16 %v767_v63, %v766_v61  ;;  %v720_v3 = vadd.f32 %v4520_v47, %v719_v1  ;;  %v922_v5 = vshll.u32 %v4526_v62, 16  ;;  %v772_v6 = vmax.f32 %v728_v0, 0.0  ;;  %v3685_v1 = vld [vmem:[#allocation10 + $0x68] sm:$0xff]  }
 0x1b9   : > { %v3271_v4 = vpop.f32.mrf.mxu0  ;;  %v919_v12 = vshrl.u32 %v4526_v62, 16 }
 0x1ba   : > { %v731_v7 = vadd.f32 %v3271_v4, %v4520_v47  ;;  %1313 = vmatprep.mubr.bf16.mxu1 %v4529_v2  ;;  %v912_v8 = vshrl.u32 %v4529_v2, 16  ;;  %v915_v9 = vshll.u32 %v4529_v2, 16  ;;  %v770_v10 = vmax.f32 %v720_v3, 0.0 }
 0x1bb   : > { %v722_v11 = vpop.f32.mrf.mxu0  ;;  %v1001_v13 = vrot.slane %v922_v5, 1  ;;  %v921_v28 = vrot.slane %v919_v12, 7 }
 0x1bc   : > { %v773_v14 = vmax.f32 %v731_v7, 0.0  ;;  %v723_v15 = vadd.f32 %v4520_v47, %v722_v11  ;;  %v914_v16 = vrot.slane %v912_v8, 7  ;;  %v999_v17 = vrot.slane %v915_v9, 1  ;;  %v3686_v11 = vld [vmem:[#allocation10 + $0x28] sm:$0xff]  }
 0x1bd   : > { %v3274_v18 = vpop.f32.mrf.mxu0  ;;  %v1002_v19 = vor.u32 %v1001_v13, %v919_v12  ;;  %v924_v46 = vor.u32 %v922_v5, %v921_v28  ;;  %v3694_v12 = vld [vmem:[#allocation10 + $0xa0] sm:$0xff]  }
 0x1be   : > { %v4539_v20 = vpack.c.bf16 %v773_v14, %v772_v6  ;;  %v771_v21 = vmax.f32 %v723_v15, 0.0  ;;  %v744_v22 = vadd.f32 %v3274_v18, %v4520_v47  ;;  %v917_v23 = vor.u32 %v915_v9, %v914_v16  ;;  %v3687_v14 = vld [vmem:[#allocation10 + $0x60] sm:$0xff]  }
 0x1bf   : > { %v735_v25 = vpop.f32.mrf.mxu0  ;;  %v1000_v26 = vor.u32 %v999_v17, %v912_v8  ;;  %v4576_v42 = vsel %vm4550_vm6, %v1002_v19, 0  ;;  %v4597_v4 = vsel %vm4544_vm5, 0, %v924_v46  ;;  %v896_v6 = vstv %s4587_s5  ;;  %v3690_v46 = vld [vmem:[#allocation10 + $0x58] sm:$0xff]   ;;  %s4085_s5 = smov [#allocation13]  }
 0x1c0   : > { %v4555_v29 = vpack.c.bf16 %v771_v21, %v770_v10  ;;  %v736_v30 = vadd.f32 %v4520_v47, %v735_v25  ;;  %v4560_v31 = vsel %vm4544_vm5, 0, %v917_v23  ;;  %v936_v37 = vshll.u32 %v4539_v20, 16 }
 0x1c1   : > { %v3275_v34 = vpop.f32.mrf.mxu0  ;;  %1314 = vmatmul.mubr.bf16.vlgmr.msra.gmra.mxu1 %v4560_v31  ;;  %v4565_v35 = vsel %vm4550_vm6, %v1000_v26, 0  ;;  %v776_v40 = vmax.f32 %v744_v22, 0.0  ;;  %v933_v49 = vshrl.u32 %v4539_v20, 16  ;;  %v4615_v17 = vpack.c.bf16 %v840_v59, %v839_v58  ;;  %v3692_v59 = vld [vmem:[#allocation10 + $0x50] sm:$0xff]  }
 0x1c2   : > { %v747_v41 = vadd.f32 %v3275_v34, %v4520_v47  ;;  %3336 = vmatprep.mubr.bf16.mxu0 %v4565_v35  ;;  %3353 = vmatpush3.bf16.msra.mxu1 %v4512_v44  ;;  %v929_v43 = vshll.u32 %v4555_v29, 16  ;;  %v926_v48 = vshrl.u32 %v4555_v29, 16  ;;  %v1005_v50 = vrot.slane %v936_v37, 1  ;;  %v3689_v44 = vld [vmem:[#allocation10 + $0xa8] sm:$0xff]   ;;  %v3688_v34 = vld [vmem:[#allocation10 + $0x20] sm:$0xff]  }
 0x1c3   : > { %1321 = vmatprep.mubr.bf16.mxu1 %v4526_v62  ;;  %3337 = vmatmul.mubr.bf16.vlgmr.msra.gmra.mxu0 %v4576_v42  ;;  %v738_v45 = vpop.f32.mrf.mxu0  ;;  %v774_v51 = vmax.f32 %v736_v30, 0.0  ;;  %vm4624_vm7 = vcmp.eq.s32.totalorder %v896_v6, 1 }
 0x1c4   : > { %v777_v52 = vmax.f32 %v747_v41, 0.0  ;;  %v739_v53 = vadd.f32 %v4520_v47, %v738_v45  ;;  %3073 = vmatpush3.bf16.msra.mxu0 %v3681_v32  ;;  %3354 = vmatprep.subr.bf16.mxu1 %v3684_v33  ;;  %v1003_v55 = vrot.slane %v929_v43, 1  ;;  %v1006_v57 = vor.u32 %v1005_v50, %v933_v49  ;;  %vm2832_vm9 = vmneg %vm4624_vm7 }
 0x1c5   : > { %v3278_v56 = vpop.f32.mrf.mxu0  ;;  %3074 = vmatprep.subr.bf16.mxu0 %v3682_v36  ;;  %v928_v5 = vrot.slane %v926_v48, 7 }
 0x1c6   : > { %v4592_v60 = vpack.c.bf16 %v777_v52, %v776_v40  ;;  %v775_v61 = vmax.f32 %v739_v53, 0.0  ;;  %v760_v63 = vadd.f32 %v3278_v56, %v4520_v47  ;;  %v1004_v0 = vor.u32 %v1003_v55, %v926_v48  ;;  %3355 = vmatpush3.bf16.msra.mxu1 %v3684_v33  ;;  %v3691_v56 = vld [vmem:[#allocation10 + $0x18] sm:$0xff]  }
 0x1c7   : > { %v751_v3 = vpop.f32.mrf.mxu0  ;;  %3356 = vmatprep.subr.bf16.mxu1 %v3689_v44  ;;  %v4609_v10 = vsel %vm4550_vm6, %v1006_v57, 0  ;;  %v931_v25 = vor.u32 %v929_v43, %v928_v5  ;;  %v4641_v48 = vsel %vm4624_vm7, 0, %v4615_v17 }
 0x1c8   : > { %v4600_v7 = vpack.c.bf16 %v775_v61, %v774_v51  ;;  %v752_v8 = vadd.f32 %v4520_v47, %v751_v3  ;;  %3075 = vmatpush3.bf16.msra.mxu0 %v3683_v54  ;;  %v4605_v9 = vsel %vm4550_vm6, %v1004_v0, 0  ;;  %v947_v15 = vshrl.u32 %v4592_v60, 16 }
 0x1c9   : > { %v3279_v13 = vpop.f32.mrf.mxu0  ;;  %1322 = vmatmul.mubr.bf16.gmra.mxu1 %v4597_v4  ;;  %3340 = vmatprep.mubr.bf16.mxu0 %v4605_v9  ;;  %v950_v16 = vshll.u32 %v4592_v60, 16  ;;  %v780_v18 = vmax.f32 %v760_v63, 0.0  ;;  %v4645_v50 = vsel %vm4544_vm5, 0, %v931_v25  ;;  %v935_v51 = vrot.slane %v933_v49, 7  ;;  %v3700_v49 = vld [vmem:[#allocation10 + $0x90] sm:$0xff]   ;;  %v3695_v25 = vld [vmem:[#allocation10 + $0x48] sm:$0xff]  }
 0x1ca   : > { %v763_v19 = vadd.f32 %v3279_v13, %v4520_v47  ;;  %1329 = vmatprep.mubr.bf16.mxu1 %v4555_v29  ;;  %3076 = vmatprep.subr.bf16.mxu0 %v3685_v1  ;;  %v940_v21 = vshrl.u32 %v4600_v7, 16  ;;  %v943_v22 = vshll.u32 %v4600_v7, 16  ;;  %v778_v30 = vmax.f32 %v752_v8, 0.0 }
 0x1cb   : > { %3341 = vmatmul.mubr.bf16.gmra.mxu0 %v4609_v10  ;;  %v754_v23 = vpop.f32.mrf.mxu0  ;;  %3357 = vmatpush3.bf16.msra.mxu1 %v3689_v44  ;;  %v1009_v26 = vrot.slane %v950_v16, 1  ;;  %v905_v3 = vshrl.u32 %v4641_v48, 16  ;;  %v901_v8 = vstv %s4656_s7  ;;  %v938_v13 = vor.u32 %v936_v37, %v935_v51  ;;  %s3917_s7 = sshll.u32 %s4085_s5, 4  ;;  %s3918_s7 = int_to_ptr.vmem [resolvable:$false] %s3917_s7 }
 0x1cc   : > { %v781_v32 = vmax.f32 %v763_v19, 0.0  ;;  %v755_v33 = vadd.f32 %v4520_v47, %v754_v23  ;;  %3077 = vmatpush3.bf16.msra.mxu0 %v3686_v11  ;;  %v1007_v36 = vrot.slane %v943_v22, 1  ;;  %3358 = vmatprep.subr.bf16.mxu1 %v3694_v12  ;;  %v3701_v19 = vld [vmem:[#allocation10 + $0x88] sm:$0xff]   ;;  %vm4685_vm8 = vcmp.eq.s32.totalorder %v901_v8, 1  ;;  %s3919_s0 = scalar_lea.vmem %s3918_s7, 2048  ;;  %p3920_p7 = scmp.lt.s32.totalorder %s5019_s10, %s3918_s7 }
 0x1cd   : > { %3078 = vmatprep.subr.bf16.mxu0 %v3687_v14  ;;  %v1010_v39 = vor.u32 %v1009_v26, %v947_v15  ;;  %v884_v40 = vpop.f32.mrf.mxu0  ;;  %v907_v37 = vrot.slane %v905_v3, 7  ;;  %vm2858_vm10 = vmneg %vm4685_vm8  ;;  %p3921_p11 = scmp.lt.s32.totalorder %s3919_s0, %s3913_s6 }
 0x1ce   : > { %v4634_v41 = vpack.c.bf16 %v781_v32, %v780_v18  ;;  %v779_v43 = vmax.f32 %v755_v33, 0.0  ;;  %v1008_v45 = vor.u32 %v1007_v36, %v940_v21  ;;  %v885_v52 = vadd.f32 %v4520_v47, %v884_v40  ;;  %v3697_v40 = vld [vmem:[#allocation10 + $0x40] sm:$0xff]  }
 0x1cf   : > { %v4649_v44 = vsel %vm4550_vm6, %v1010_v39, 0  ;;  %3359 = vmatpush3.bf16.msra.mxu1 %v3694_v12  ;;  %v3318_v53 = vpop.f32.mrf.mxu0  ;;  %v3693_v12 = vld [vmem:[#allocation10 + $0x10] sm:$0xff]   ;;  %v4696_v33 = vsel %vm4544_vm5, 0, %v938_v13  ;;  %v942_v39 = vrot.slane %v940_v21, 7  ;;  %p3922_p0 = por %p3921_p11, %p3920_p7 }
 0x1d0   : > { %v4658_v54 = vpack.c.bf16 %v779_v43, %v778_v30  ;;  %3079 = vmatpush3.bf16.msra.mxu0 %v3688_v34  ;;  %v4662_v55 = vsel %vm4550_vm6, %v1008_v45, 0  ;;  %v961_v57 = vshrl.u32 %v4634_v41, 16  ;;  %v964_v58 = vshll.u32 %v4634_v41, 16  ;;  %3360 = vmatprep.subr.bf16.mxu1 %v3699_v38  ;;  %v3702_v43 = vld [vmem:[#allocation10 + $0x80] sm:$0xff]   ;;  %v3703_v53 = vld [vmem:[#allocation10 + $0x1f8] sm:$0xff]  }
 0x1d1   : > { %1330 = vmatmul.mubr.bf16.gmra.mxu1 %v4645_v50  ;;  %3344 = vmatprep.mubr.bf16.mxu0 %v4662_v55  ;;  %v887_v61 = vpop.f32.mrf.mxu0  ;;  %v891_v5 = vmax.f32 %v885_v52, 0.0  ;;  %v908_v30 = vshll.u32 %v4641_v48, 16  ;;  %v3698_v52 = vld [vmem:[#allocation10] sm:$0xff]   ;;  %v945_v28 = vor.u32 %v943_v22, %v942_v39  ;;  %v3710_v39 = vld [vmem:[#allocation10 + $0x1a8] sm:$0xff]   ;;  %p3923_p4 = pnand %p3922_p0, %p3916_p12 }
 0x1d2   : > { %1337 = vmatprep.mubr.bf16.mxu1 %v4539_v20  ;;  %3080 = vmatprep.subr.bf16.mxu0 %v3690_v46  ;;  %v954_v63 = vshrl.u32 %v4658_v54, 16  ;;  %v957_v0 = vshll.u32 %v4658_v54, 16  ;;  %v1013_v1 = vrot.slane %v964_v58, 1  ;;  %v888_v6 = vadd.f32 %v4520_v47, %v887_v61  ;;  %v3726_v48 = vld [vmem:[#allocation10 + $0x200] sm:$0xff]  }
 0x1d3   : > { %3345 = vmatmul.mubr.bf16.gmra.mxu0 %v4649_v44  ;;  %3361 = vmatpush3.bf16.msra.mxu1 %v3699_v38  ;;  %v3319_v11 = vpop.f32.mrf.mxu0  ;;  %v3696_v38 = vld [vmem:[#allocation10 + $0x8] sm:$0xff]   ;;  %v910_v21 = vor.u32 %v908_v30, %v907_v37  ;;  %v4730_v22 = vsel %vm4544_vm5, 0, %v945_v28  ;;  %v3724_v28 = vld [vmem:[#allocation10 + $0x1c0] sm:$0xff]  }
 0x1d4   : > { %3081 = vmatpush3.bf16.msra.mxu0 %v3691_v56  ;;  %v1011_v14 = vrot.slane %v957_v0, 1  ;;  %v1014_v18 = vor.u32 %v1013_v1, %v961_v57  ;;  %3362 = vmatprep.subr.bf16.mxu1 %v3700_v49  ;;  %v892_v23 = vmax.f32 %v888_v6, 0.0  ;;  %v3708_v11 = vld [vmem:[#allocation10 + $0x230] sm:$0xff]  }
 0x1d5   : > { %3082 = vmatprep.subr.bf16.mxu0 %v3692_v59  ;;  %v3705_v59 = vld [vmem:[#allocation10 + $0x238] sm:$0xff]  }
 0x1d6   : > { %v1012_v47 = vor.u32 %v1011_v14, %v954_v63  ;;  %v4692_v32 = vpack.c.bf16 %v892_v23, %v891_v5  ;;  %v4704_v36 = vsel %vm4550_vm6, %v1014_v18, 0  ;;  %v987_v5 = vsel %vm4544_vm5, 0, %v910_v21  ;;  %v3714_v18 = vld [vmem:[#allocation10 + $0x220] sm:$0xff]   ;;  %v3721_v21 = vld [vmem:[#allocation10 + $0x1c8] sm:$0xff]  }
 0x1d7   : > { %3363 = vmatpush3.bf16.msra.mxu1 %v3700_v49  ;;  %v956_v14 = vrot.slane %v954_v63, 7  ;;  %v997_v63 = vrot.slane %v908_v30, 1  ;;  %v963_v23 = vrot.slane %v961_v57, 7  ;;  %v3723_v57 = vld [vmem:[#allocation10 + $0x208] sm:$0xff]   ;;  %v3707_v30 = vld [vmem:[#allocation10 + $0x1b0] sm:$0xff]  }
 0x1d8   : > { %3083 = vmatpush3.bf16.msra.mxu0 %v3693_v12  ;;  %v4700_v34 = vsel %vm4550_vm6, %v1012_v47, 0  ;;  %3364 = vmatprep.subr.bf16.mxu1 %v3701_v19  ;;  %v903_v45 = vsel %vm4685_vm8, 0, %v4692_v32  ;;  %v3711_v12 = vld [vmem:[#allocation10 + $0x228] sm:$0xff]  }
 0x1d9   : > { %1338 = vmatmul.mubr.bf16.gmra.mxu1 %v4696_v33  ;;  %3348 = vmatprep.mubr.bf16.mxu0 %v4700_v34  ;;  %v971_v46 = vshll.u32 %v903_v45, 16  ;;  %v968_v51 = vshrl.u32 %v903_v45, 16  ;;  %v966_v47 = vor.u32 %v964_v58, %v963_v23  ;;  %v3704_v58 = vld [vmem:[#allocation10 + $0x1b8] sm:$0xff]  }
 0x1da   : > { %1345 = vmatprep.mubr.bf16.mxu1 %v4600_v7  ;;  %3084 = vmatprep.subr.bf16.mxu0 %v3695_v25  ;;  %v3716_v45 = vld [vmem:[#allocation10 + $0x198] sm:$0xff]  }
 0x1db   : > { %3349 = vmatmul.mubr.bf16.gmra.mxu0 %v4704_v36  ;;  %3365 = vmatpush3.bf16.msra.mxu1 %v3701_v19  ;;  %v1015_v56 = vrot.slane %v971_v46, 1  ;;  %v970_v49 = vrot.slane %v968_v51, 7  ;;  %v4777_v37 = vsel %vm4544_vm5, 0, %v966_v47 }
 0x1dc   : > { %3085 = vmatpush3.bf16.msra.mxu0 %v3696_v38  ;;  %2833 = vmatprep.mubr.msk.bf16.mxu0 %vm2832_vm9, %v4615_v17  ;;  %v949_v17 = vrot.slane %v947_v15, 7  ;;  %v3709_v38 = vld [vmem:[#allocation10 + $0x1e8] sm:$0xff]  }
 0x1dd   : > { %3086 = vmatprep.subr.bf16.mxu0 %v3697_v40  ;;  %3366 = vmatprep.subr.bf16.mxu1 %v3702_v43  ;;  %v4722_v61 = vor.u32 %v1015_v56, %v968_v51  ;;  %v4724_v1 = vor.u32 %v971_v46, %v970_v49  ;;  %v3712_v40 = vld [vmem:[#allocation10 + $0x1e0] sm:$0xff]   ;;  %v3718_v46 = vld [vmem:[#allocation10 + $0x1d0] sm:$0xff]  }
 0x1de   : > { %v952_v15 = vor.u32 %v950_v16, %v949_v17  ;;  %v3717_v16 = vld [vmem:[#allocation10 + $0x218] sm:$0xff]   ;;  %v3719_v51 = vld [vmem:[#allocation10 + $0x190] sm:$0xff]  }
 0x1df   : > { %3367 = vmatpush3.bf16.msra.mxu1 %v3702_v43  ;;  %v1039_v6 = vsel %vm4550_vm6, %v4722_v61, 0  ;;  %v996_v8 = vsel %vm4544_vm5, 0, %v4724_v1  ;;  %v3715_v43 = vld [vmem:[#allocation10 + $0x1d8] sm:$0xff]  }
 0x1e0   : > { %3087 = vmatpush3.bf16.msra.mxu0 %v3698_v52  ;;  %3152 = vmatprep.subr.bf16.mxu1 %v3703_v53  ;;  %v4747_v13 = vsel %vm4544_vm5, 0, %v952_v15  ;;  %v3722_v52 = vld [vmem:[#allocation10 + $0x188] sm:$0xff]   ;;  %v3725_v53 = vld [vmem:[#allocation10 + $0x180] sm:$0xff]  }
 0x1e1   : > { %1346 = vmatmul.mubr.bf16.gmra.mxu1 %v4730_v22  ;;  %3384 = vmatprep.subr.bf16.mxu0 %v3705_v59 }
 0x1e2   : > { %1353 = vmatprep.mubr.bf16.mxu1 %v4592_v60 }
 0x1e3   : > { %1652 = vmatmul.mubr.bf16.vlgmr.msra.gmra.mxu0 %v987_v5 }
 0x1e4   : > { %1659 = vmatprep.mubr.bf16.mxu0 %v4529_v2  ;;  %3385 = vmatpush3.bf16.msra.mxu0 %v3705_v59  ;;  %v959_v2 = vor.u32 %v957_v0, %v956_v14  ;;  %v998_v0 = vor.u32 %v997_v63, %v905_v3  ;;  %v3706_v3 = vld [vmem:[#allocation10 + $0x1f0] sm:$0xff]  }
 0x1e5   : > { %3386 = vmatprep.subr.bf16.mxu0 %v3708_v11 }
 0x1e6   : > { %v4761_v19 = vsel %vm4544_vm5, 0, %v959_v2  ;;  %v1030_v25 = vsel %vm4550_vm6, %v998_v0, 0 }
 0x1e8   : > { %3387 = vmatpush3.bf16.msra.mxu0 %v3708_v11 }
 0x1e9   : > { %1354 = vmatmul.mubr.bf16.gmra.mxu1 %v4747_v13  ;;  %3388 = vmatprep.subr.bf16.mxu0 %v3711_v12 }
 0x1ea   : > { %1361 = vmatprep.mubr.bf16.mxu1 %v4658_v54 }
 0x1eb   : > { %1660 = vmatmul.mubr.bf16.gmra.mxu0 %v4560_v31  ;;  %v3720_v31 = vld [vmem:[#allocation10 + $0x210] sm:$0xff]  }
 0x1ec   : > { %1667 = vmatprep.mubr.bf16.mxu0 %v4526_v62  ;;  %3389 = vmatpush3.bf16.msra.mxu0 %v3711_v12 }
 0x1ed   : > { %3390 = vmatprep.subr.bf16.mxu0 %v3714_v18 }
 0x1f0   : > { %3391 = vmatpush3.bf16.msra.mxu0 %v3714_v18 }
 0x1f1   : > { %1362 = vmatmul.mubr.bf16.gmra.mxu1 %v4761_v19  ;;  %3392 = vmatprep.subr.bf16.mxu0 %v3717_v16 }
 0x1f2   : > { %1369 = vmatprep.mubr.bf16.mxu1 %v4634_v41 }
 0x1f3   : > { %1668 = vmatmul.mubr.bf16.gmra.mxu0 %v4597_v4 }
 0x1f4   : > { %1675 = vmatprep.mubr.bf16.mxu0 %v4555_v29  ;;  %3393 = vmatpush3.bf16.msra.mxu0 %v3717_v16 }
 0x1f5   : > { %3394 = vmatprep.subr.bf16.mxu0 %v3720_v31 }
 0x1f8   : > { %3395 = vmatpush3.bf16.msra.mxu0 %v3720_v31 }
 0x1f9   : > { %1370 = vmatmul.mubr.bf16.gmra.mxu1 %v4777_v37  ;;  %3396 = vmatprep.subr.bf16.mxu0 %v3723_v57 }
 0x1fa   : > { %3368 = vmatprep.mubr.bf16.mxu1 %v1030_v25 }
 0x1fb   : > { %1676 = vmatmul.mubr.bf16.gmra.mxu0 %v4645_v50 }
 0x1fc   : > { %1683 = vmatprep.mubr.bf16.mxu0 %v4539_v20  ;;  %3397 = vmatpush3.bf16.msra.mxu0 %v3723_v57 }
 0x1fd   : > { %3398 = vmatprep.subr.bf16.mxu0 %v3726_v48 }
 0x200   : > { %3399 = vmatpush3.bf16.msra.mxu0 %v3726_v48 }
 0x201   : > { %3369 = vmatmul.mubr.bf16.vlgmr.msra.gmra.mxu1 %v4565_v35  ;;  %v3713_v35 = vld [vmem:[#allocation10 + $0x1a0] sm:$0xff]  }
 0x202   : > { %3153 = vmatpush3.bf16.msra.mxu1 %v3704_v58  ;;  %3372 = vmatprep.mubr.bf16.mxu1 %v4576_v42 }
 0x203   : > { %1684 = vmatmul.mubr.bf16.gmra.mxu0 %v4696_v33  ;;  %3154 = vmatprep.subr.bf16.mxu1 %v3706_v3 }
 0x204   : > { %1691 = vmatprep.mubr.bf16.mxu0 %v4600_v7 }
 0x206   : > { %3155 = vmatpush3.bf16.msra.mxu1 %v3707_v30 }
 0x207   : > { %3156 = vmatprep.subr.bf16.mxu1 %v3709_v38 }
 0x209   : > { %3373 = vmatmul.mubr.bf16.gmra.mxu1 %v4605_v9 }
 0x20a   : > { %3157 = vmatpush3.bf16.msra.mxu1 %v3710_v39  ;;  %3376 = vmatprep.mubr.bf16.mxu1 %v4609_v10 }
 0x20b   : > { %1692 = vmatmul.mubr.bf16.gmra.mxu0 %v4730_v22  ;;  %3158 = vmatprep.subr.bf16.mxu1 %v3712_v40 }
 0x20c   : > { %1699 = vmatprep.mubr.bf16.mxu0 %v4592_v60 }
 0x20e   : > { %3159 = vmatpush3.bf16.msra.mxu1 %v3713_v35 }
 0x20f   : > { %3160 = vmatprep.subr.bf16.mxu1 %v3715_v43 }
 0x211   : > { %3377 = vmatmul.mubr.bf16.gmra.mxu1 %v4662_v55 }
 0x212   : > { %3161 = vmatpush3.bf16.msra.mxu1 %v3716_v45  ;;  %3380 = vmatprep.mubr.bf16.mxu1 %v4649_v44 }
 0x213   : > { %1700 = vmatmul.mubr.bf16.gmra.mxu0 %v4747_v13  ;;  %3162 = vmatprep.subr.bf16.mxu1 %v3718_v46 }
 0x214   : > { %1707 = vmatprep.mubr.bf16.mxu0 %v4658_v54 }
 0x216   : > { %3163 = vmatpush3.bf16.msra.mxu1 %v3719_v51 }
 0x217   : > { %3164 = vmatprep.subr.bf16.mxu1 %v3721_v21 }
 0x219   : > { %3381 = vmatmul.mubr.bf16.gmra.mxu1 %v4700_v34 }
 0x21a   : > { %3165 = vmatpush3.bf16.msra.mxu1 %v3722_v52  ;;  %2038 = vmatprep.mubr.bf16.mxu1 %v4526_v62  ;;  %v3727_v62 = vld [vmem:[#allocation11 + $0x38] sm:$0xff]  }
 0x21b   : > { %1708 = vmatmul.mubr.bf16.gmra.mxu0 %v4761_v19  ;;  %3166 = vmatprep.subr.bf16.mxu1 %v3724_v28 }
 0x21c   : > { %3400 = vmatprep.mubr.bf16.mxu0 %v4576_v42  ;;  %3416 = vmatprep.subr.bf16.mxu0 %v3727_v62  ;;  %v3732_v42 = vld [vmem:[#allocation11 + $0x10] sm:$0xff]  }
 0x21e   : > { %3167 = vmatpush3.bf16.msra.mxu1 %v3725_v53 }
 0x21f   : > { %3448 = vmatprep.subr.bf16.mxu1 %v3727_v62 }
 0x221   : > { %2039 = vmatmul.mubr.bf16.vlgmr.msra.gmra.mxu1 %v4597_v4  ;;  %v3734_v4 = vld [vmem:[#allocation11] sm:$0xff]  }
 0x222   : > { %2046 = vmatprep.mubr.bf16.mxu1 %v4555_v29  ;;  %3456 = vmatpush3.bf16.msra.mxu1 %v3727_v62  ;;  %v3730_v29 = vld [vmem:[#allocation11 + $0x20] sm:$0xff]  }
 0x223   : > { %3401 = vmatmul.mubr.bf16.vlgmr.msra.gmra.mxu0 %v4605_v9 }
 0x224   : > { %3404 = vmatprep.mubr.bf16.mxu0 %v4609_v10  ;;  %3417 = vmatpush3.bf16.msra.mxu0 %v3727_v62 }
 0x229   : > { %2047 = vmatmul.mubr.bf16.gmra.mxu1 %v4645_v50 }
 0x22a   : > { %2054 = vmatprep.mubr.bf16.mxu1 %v4539_v20  ;;  %v3728_v20 = vld [vmem:[#allocation11 + $0x30] sm:$0xff]  }
 0x22b   : > { %3405 = vmatmul.mubr.bf16.gmra.mxu0 %v4662_v55  ;;  %3418 = vmatprep.subr.bf16.mxu0 %v3728_v20 }
 0x22c   : > { %3408 = vmatprep.mubr.bf16.mxu0 %v4649_v44  ;;  %3449 = vmatprep.subr.bf16.mxu1 %v3728_v20 }
 0x22d   : > { %3419 = vmatpush3.bf16.msra.mxu0 %v3728_v20  ;;  %3457 = vmatpush3.bf16.msra.mxu1 %v3728_v20 }
 0x22e   : > { %3420 = vmatprep.subr.bf16.mxu0 %v3729_v27  ;;  %3450 = vmatprep.subr.bf16.mxu1 %v3729_v27 }
 0x231   : > { %2055 = vmatmul.mubr.bf16.gmra.mxu1 %v4696_v33  ;;  %3421 = vmatpush3.bf16.msra.mxu0 %v3729_v27 }
 0x232   : > { %2062 = vmatprep.mubr.bf16.mxu1 %v4600_v7  ;;  %3458 = vmatpush3.bf16.msra.mxu1 %v3729_v27 }
 0x233   : > { %3409 = vmatmul.mubr.bf16.gmra.mxu0 %v4700_v34  ;;  %3422 = vmatprep.subr.bf16.mxu0 %v3730_v29 }
 0x234   : > { %3412 = vmatprep.mubr.bf16.mxu0 %v4704_v36  ;;  %3451 = vmatprep.subr.bf16.mxu1 %v3730_v29 }
 0x235   : > { %3423 = vmatpush3.bf16.msra.mxu0 %v3730_v29 }
 0x236   : > { %3459 = vmatpush3.bf16.msra.mxu1 %v3730_v29  ;;  %3424 = vmatprep.subr.bf16.mxu0 %v3731_v24 }
 0x237   : > { %3452 = vmatprep.subr.bf16.mxu1 %v3731_v24 }
 0x239   : > { %2063 = vmatmul.mubr.bf16.gmra.mxu1 %v4730_v22  ;;  %3425 = vmatpush3.bf16.msra.mxu0 %v3731_v24 }
 0x23a   : > { %2070 = vmatprep.mubr.bf16.mxu1 %v4592_v60  ;;  %3460 = vmatpush3.bf16.msra.mxu1 %v3731_v24  ;;  %v3733_v60 = vld [vmem:[#allocation11 + $0x8] sm:$0xff]  }
 0x23b   : > { %3413 = vmatmul.mubr.bf16.gmra.mxu0 %v1039_v6  ;;  %3426 = vmatprep.subr.bf16.mxu0 %v3732_v42 }
 0x23c   : > { %3453 = vmatprep.subr.bf16.mxu1 %v3732_v42 }
 0x23d   : > { %3427 = vmatpush3.bf16.msra.mxu0 %v3732_v42 }
 0x23e   : > { %3461 = vmatpush3.bf16.msra.mxu1 %v3732_v42  ;;  %3428 = vmatprep.subr.bf16.mxu0 %v3733_v60 }
 0x23f   : > { %3454 = vmatprep.subr.bf16.mxu1 %v3733_v60 }
 0x241   : > { %2071 = vmatmul.mubr.bf16.gmra.mxu1 %v4747_v13  ;;  %3429 = vmatpush3.bf16.msra.mxu0 %v3733_v60 }
 0x242   : > { %2078 = vmatprep.mubr.bf16.mxu1 %v4658_v54  ;;  %3462 = vmatpush3.bf16.msra.mxu1 %v3733_v60 }
 0x243   : > { %3430 = vmatprep.subr.bf16.mxu0 %v3734_v4  ;;  %3455 = vmatprep.subr.bf16.mxu1 %v3734_v4 }
 0x245   : > { %3431 = vmatpush3.bf16.msra.mxu0 %v3734_v4 }
 0x246   : > { %3463 = vmatpush3.bf16.msra.mxu1 %v3734_v4 }
 0x249   : > { %2079 = vmatmul.mubr.bf16.gmra.mxu1 %v4761_v19 }
 0x24a   : > { %2086 = vmatprep.mubr.bf16.mxu1 %v4634_v41 }
 0x251   : > { %2087 = vmatmul.mubr.bf16.gmra.mxu1 %v4777_v37 }
 0x252   : > { %2859 = vmatprep.mubr.msk.bf16.mxu1 %vm2858_vm10, %v4692_v32 }
 0x259   : > { %2095 = vmatmul.mubr.bf16.gmra.mxu1 %v996_v8 }
 0x281   : > { %v3008_v7 = vpop.f32.mrf.mxu1 }
 0x283   : > { %v3338_v9 = vpop.f32.mrf.mxu0  ;;  %v3009_v10 = vpop.f32.mrf.mxu1 }
 0x284   : > { %v3010_v41 = vadd.f32 %v3009_v10, %v3008_v7 }
 0x285   : > { %v1412_v50 = vpop.f32.mrf.mxu0  ;;  %v3011_v44 = vpop.f32.mrf.mxu1 }
 0x286   : > { %v1413_v54 = vadd.f32 %v3010_v41, %v1412_v50 }
 0x287   : > { %v3339_v55 = vpop.f32.mrf.mxu0  ;;  %v3012_v26 = vpop.f32.mrf.mxu1 }
 0x288   : > { %v3013_v32 = vadd.f32 %v3012_v26, %v3011_v44 }
 0x289   : > { %v1415_v33 = vpop.f32.mrf.mxu0  ;;  %v3014_v34 = vpop.f32.mrf.mxu1 }
 0x28a   : > { %v4828_v36 = vadd.f32 %v3013_v32, %v1415_v33 }
 0x28b   : > { %v3342_v56 = vpop.f32.mrf.mxu0  ;;  %v3015_v49 = vpop.f32.mrf.mxu1 }
 0x28c   : > { %v3016_v59 = vadd.f32 %v3015_v49, %v3014_v34 }
 0x28d   : > { %v1428_v61 = vpop.f32.mrf.mxu0  ;;  %v3017_v1 = vpop.f32.mrf.mxu1 }
 0x28e   : > { %v1421_v5 = vadd.f32 %v3338_v9, %v3016_v59 }
 0x28f   : > { %v3343_v22 = vpop.f32.mrf.mxu0  ;;  %v3018_v17 = vpop.f32.mrf.mxu1 }
 0x290   : > { %v3019_v6 = vadd.f32 %v3018_v17, %v3017_v1 }
 0x291   : > { %v1431_v8 = vpop.f32.mrf.mxu0  ;;  %v3020_v11 = vpop.f32.mrf.mxu1 }
 0x292   : > { %v4830_v15 = vadd.f32 %v3339_v55, %v3019_v6 }
 0x293   : > { %v3346_v12 = vpop.f32.mrf.mxu0  ;;  %v3021_v13 = vpop.f32.mrf.mxu1 }
 0x294   : > { %v3022_v14 = vadd.f32 %v3021_v13, %v3020_v11 }
 0x295   : > { %v1444_v18 = vpop.f32.mrf.mxu0  ;;  %v3023_v2 = vpop.f32.mrf.mxu1 }
 0x296   : > { %v1429_v16 = vadd.f32 %v3022_v14, %v1428_v61 }
 0x297   : > { %v3347_v63 = vpop.f32.mrf.mxu0  ;;  %v3024_v19 = vpop.f32.mrf.mxu1 }
 0x298   : > { %v3025_v23 = vadd.f32 %v3024_v19, %v3023_v2 }
 0x299   : > { %v1447_v31 = vpop.f32.mrf.mxu0  ;;  %v3026_v0 = vpop.f32.mrf.mxu1 }
 0x29a   : > { %v4832_v47 = vadd.f32 %v3025_v23, %v1431_v8 }
 0x29b   : > { %v3350_v57 = vpop.f32.mrf.mxu0  ;;  %v3027_v25 = vpop.f32.mrf.mxu1 }
 0x29c   : > { %v3028_v37 = vadd.f32 %v3027_v25, %v3026_v0 }
 0x29d   : > { %v1460_v48 = vpop.f32.mrf.mxu0  ;;  %v3029_v58 = vpop.f32.mrf.mxu1 }
 0x29e   : > { %v1437_v3 = vadd.f32 %v3342_v56, %v3028_v37 }
 0x29f   : > { %v3351_v30 = vpop.f32.mrf.mxu0  ;;  %v3030_v38 = vpop.f32.mrf.mxu1 }
 0x2a0   : > { %v3031_v39 = vadd.f32 %v3030_v38, %v3029_v58 }
 0x2a1   : > { %v1463_v40 = vpop.f32.mrf.mxu0  ;;  %v3032_v35 = vpop.f32.mrf.mxu1 }
 0x2a2   : > { %v4834_v43 = vadd.f32 %v3343_v22, %v3031_v39 }
 0x2a3   : > { %v3088_v45 = vpop.f32.mrf.mxu0  ;;  %v3033_v46 = vpop.f32.mrf.mxu1 }
 0x2a4   : > { %v3034_v51 = vadd.f32 %v3033_v46, %v3032_v35 }
 0x2a5   : > { %v3089_v21 = vpop.f32.mrf.mxu0  ;;  %v3035_v52 = vpop.f32.mrf.mxu1 }
 0x2a6   : > { %v1445_v28 = vadd.f32 %v3034_v51, %v1444_v18  ;;  %v3090_v53 = vadd.f32 %v3089_v21, %v3088_v45 }
 0x2a7   : > { %v4836_v62 = vpop.f32.mrf.mxu0  ;;  %v3036_v20 = vpop.f32.mrf.mxu1 }
 0x2a8   : > { %v3037_v27 = vadd.f32 %v3036_v20, %v3035_v52  ;;  %v4838_v29 = vadd.f32 %v3090_v53, %v1413_v54 }
 0x2a9   : > { %v4840_v24 = vpop.f32.mrf.mxu0  ;;  %v3038_v42 = vpop.f32.mrf.mxu1 }
 0x2aa   : > { %v4842_v60 = vadd.f32 %v3037_v27, %v1447_v31 }
 0x2ab   : > { %v3094_v4 = vpop.f32.mrf.mxu0  ;;  %v3039_v7 = vpop.f32.mrf.mxu1 }
 0x2ac   : > { %v3040_v9 = vadd.f32 %v3039_v7, %v3038_v42 }
 0x2ad   : > { %v3095_v10 = vpop.f32.mrf.mxu0  ;;  %v3041_v41 = vpop.f32.mrf.mxu1 }
 0x2ae   : > { %v1453_v50 = vadd.f32 %v3346_v12, %v3040_v9  ;;  %v3096_v44 = vadd.f32 %v3095_v10, %v3094_v4 }
 0x2af   : > { %v4844_v55 = vpop.f32.mrf.mxu0  ;;  %v3042_v26 = vpop.f32.mrf.mxu1 }
 0x2b0   : > { %v3043_v32 = vadd.f32 %v3042_v26, %v3041_v41  ;;  %v4846_v33 = vadd.f32 %v3096_v44, %v1421_v5 }
 0x2b1   : > { %v4848_v54 = vpop.f32.mrf.mxu0  ;;  %v3044_v34 = vpop.f32.mrf.mxu1 }
 0x2b2   : > { %v4850_v56 = vadd.f32 %v3347_v63, %v3043_v32 }
 0x2b3   : > { %v3100_v49 = vpop.f32.mrf.mxu0  ;;  %v3045_v59 = vpop.f32.mrf.mxu1 }
 0x2b4   : > { %v3046_v61 = vadd.f32 %v3045_v59, %v3044_v34 }
 0x2b5   : > { %v3101_v1 = vpop.f32.mrf.mxu0  ;;  %v3047_v22 = vpop.f32.mrf.mxu1 }
 0x2b6   : > { %v1461_v17 = vadd.f32 %v3046_v61, %v1460_v48  ;;  %v3102_v6 = vadd.f32 %v3101_v1, %v3100_v49 }
 0x2b7   : > { %v4852_v8 = vpop.f32.mrf.mxu0  ;;  %v3048_v11 = vpop.f32.mrf.mxu1 }
 0x2b8   : > { %v3049_v12 = vadd.f32 %v3048_v11, %v3047_v22  ;;  %v4854_v13 = vadd.f32 %v3102_v6, %v1429_v16 }
 0x2b9   : > { %v4856_v5 = vpop.f32.mrf.mxu0  ;;  %v3050_v14 = vpop.f32.mrf.mxu1 }
 0x2ba   : > { %v4858_v18 = vadd.f32 %v3049_v12, %v1463_v40 }
 0x2bb   : > { %v3106_v2 = vpop.f32.mrf.mxu0  ;;  %v3051_v63 = vpop.f32.mrf.mxu1 }
 0x2bc   : > { %v3052_v19 = vadd.f32 %v3051_v63, %v3050_v14 }
 0x2bd   : > { %v3107_v23 = vpop.f32.mrf.mxu0  ;;  %v3053_v31 = vpop.f32.mrf.mxu1 }
 0x2be   : > { %v1469_v0 = vadd.f32 %v3350_v57, %v3052_v19  ;;  %v3108_v25 = vadd.f32 %v3107_v23, %v3106_v2 }
 0x2bf   : > { %v4860_v37 = vpop.f32.mrf.mxu0  ;;  %v3054_v48 = vpop.f32.mrf.mxu1 }
 0x2c0   : > { %v3055_v58 = vadd.f32 %v3054_v48, %v3053_v31  ;;  %v4862_v38 = vadd.f32 %v3108_v25, %v1437_v3 }
 0x2c1   : > { %v4864_v16 = vpop.f32.mrf.mxu0  ;;  %v4866_v39 = vpop.f32.mrf.mxu1 }
 0x2c2   : > { %v1472_v35 = vadd.f32 %v3351_v30, %v3055_v58 }
 0x2c3   : > { %v3112_v40 = vpop.f32.mrf.mxu0  ;;  %v1750_v45 = vpop.f32.mrf.mxu1 }
 0x2c5   : > { %v3113_v46 = vpop.f32.mrf.mxu0  ;;  %v4868_v51 = vpop.f32.mrf.mxu1 }
 0x2c6   : > { %v3114_v21 = vadd.f32 %v3113_v46, %v3112_v40 }
 0x2c7   : > { %v4870_v52 = vpop.f32.mrf.mxu0  ;;  %v1753_v57 = vpop.f32.mrf.mxu1 }
 0x2c8   : > { %v4872_v53 = vadd.f32 %v3114_v21, %v1445_v28 }
 0x2c9   : > { %v4874_v20 = vpop.f32.mrf.mxu0  ;;  %v4876_v3 = vpop.f32.mrf.mxu1 }
 0x2cb   : > { %v3118_v27 = vpop.f32.mrf.mxu0  ;;  %v4878_v42 = vpop.f32.mrf.mxu1 }
 0x2cd   : > { %v3119_v4 = vpop.f32.mrf.mxu0  ;;  %v4880_v30 = vpop.f32.mrf.mxu1 }
 0x2ce   : > { %v3120_v7 = vadd.f32 %v3119_v4, %v3118_v27  ;;  %v3093_v27 = vadd.f32 %v4840_v24, %v4836_v62 }
 0x2cf   : > { %v4882_v9 = vpop.f32.mrf.mxu0  ;;  %v4884_v10 = vpop.f32.mrf.mxu1 }
 0x2d0   : > { %v1694_v41 = vadd.f32 %v3120_v7, %v1453_v50 }
 0x2d1   : > { %v4886_v44 = vpop.f32.mrf.mxu0  ;;  %v3378_v28 = vpop.f32.mrf.mxu1 }
 0x2d2   : > { %v4888_v26 = vadd.f32 %v3378_v28, %v1694_v41 }
 0x2d3   : > { %v3124_v32 = vpop.f32.mrf.mxu0  ;;  %v4890_v34 = vpop.f32.mrf.mxu1 }
 0x2d5   : > { %v3125_v49 = vpop.f32.mrf.mxu0  ;;  %v4892_v59 = vpop.f32.mrf.mxu1 }
 0x2d6   : > { %v3126_v61 = vadd.f32 %v3125_v49, %v3124_v32  ;;  %v1751_v32 = vadd.f32 %v1750_v45, %v4838_v29  ;;  %v3099_v29 = vadd.f32 %v4848_v54, %v4844_v55 }
 0x2d7   : > { %v4894_v1 = vpop.f32.mrf.mxu0  ;;  %v4896_v22 = vpop.f32.mrf.mxu1 }
 0x2d8   : > { %v4898_v6 = vadd.f32 %v3126_v61, %v1461_v17 }
 0x2d9   : > { %v4900_v11 = vpop.f32.mrf.mxu0  ;;  %v3382_v50 = vpop.f32.mrf.mxu1 }
 0x2db   : > { %v3130_v12 = vpop.f32.mrf.mxu0  ;;  %v4902_v14 = vpop.f32.mrf.mxu1 }
 0x2dd   : > { %v3131_v2 = vpop.f32.mrf.mxu0  ;;  %v3383_v63 = vpop.f32.mrf.mxu1 }
 0x2de   : > { %v3132_v19 = vadd.f32 %v3131_v2, %v3130_v12 }
 0x2df   : > { %v3133_v23 = vpop.f32.mrf.mxu0  ;;  %v4904_v31 = vpop.f32.mrf.mxu1 }
 0x2e0   : > { %v1710_v25 = vadd.f32 %v3132_v19, %v1469_v0 }
 0x2e1   : > { %v3134_v48 = vpop.f32.mrf.mxu0  ;;  %v3168_v58 = vpop.f32.mrf.mxu1 }
 0x2e2   : > { %v4906_v40 = vadd.f32 %v3382_v50, %v1710_v25  ;;  %v3135_v46 = vadd.f32 %v3134_v48, %v3133_v23  ;;  %v1657_v50 = vadd.f32 %v3093_v27, %v4828_v36  ;;  %v4917_v23 = vld [vmem:[%s5209_s24] ss:$0 sm:$0xff] }
 0x2e3   : > { %v3402_v17 = vpop.f32.mrf.mxu0  ;;  %v3169_v21 = vpop.f32.mrf.mxu1 }
 0x2e4   : > { %v1713_v4 = vadd.f32 %v3135_v46, %v1472_v35  ;;  %v3170_v7 = vadd.f32 %v3169_v21, %v3168_v58  ;;  %v1754_v35 = vadd.f32 %v1753_v57, %v1657_v50  ;;  %v1759_v21 = vadd.f32 %v4866_v39, %v4846_v33 }
 0x2e5   : > { %v2137_v41 = vpop.f32.mrf.mxu0  ;;  %v3171_v28 = vpop.f32.mrf.mxu1 }
 0x2e6   : > { %v4911_v49 = vadd.f32 %v3383_v63, %v1713_v4  ;;  %v2138_v61 = vadd.f32 %v3170_v7, %v2137_v41  ;;  %v1665_v7 = vadd.f32 %v3099_v29, %v4830_v15 }
 0x2e7   : > { %v3403_v0 = vpop.f32.mrf.mxu0  ;;  %v3172_v12 = vpop.f32.mrf.mxu1 }
 0x2e8   : > { %v2200_v2 = vadd.f32 %v2138_v61, %v1751_v32  ;;  %v3173_v19 = vadd.f32 %v3172_v12, %v3171_v28  ;;  %v1762_v12 = vadd.f32 %v4868_v51, %v1665_v7 }
 0x2e9   : > { %v2140_v62 = vpop.f32.mrf.mxu0  ;;  %v3174_v24 = vpop.f32.mrf.mxu1 }
 0x2ea   : > { %v2141_v25 = vadd.f32 %v3173_v19, %v2140_v62  ;;  %v2223_v63 = vadd.f32 %v4917_v23, %v2200_v2  ;;  %v3105_v19 = vadd.f32 %v4856_v5, %v4852_v8 }
 0x2eb   : > { %v3175_v45 = vpop.f32.mrf.mxu1  ;;  %v3406_v36 = vpop.f32.mrf.mxu0 }
 0x2ec   : > { %v2201_v48 = vadd.f32 %v2141_v25, %v1754_v35  ;;  %v3176_v58 = vadd.f32 %v3175_v45, %v3174_v24  ;;  %v2239_v41 = vmax.f32 %v2223_v63, 0.0  ;;  %v1767_v35 = vadd.f32 %v4878_v42, %v4854_v13 }
 0x2ed   : > { %v3177_v46 = vpop.f32.mrf.mxu1  ;;  %v2153_v54 = vpop.f32.mrf.mxu0  ;;  %v1673_v51 = vadd.f32 %v3105_v19, %v4832_v47 }
 0x2ee   : > { %v2224_v27 = vadd.f32 %v4917_v23, %v2201_v48  ;;  %v2146_v4 = vadd.f32 %v3402_v17, %v3176_v58 }
 0x2ef   : > { %v3178_v57 = vpop.f32.mrf.mxu1  ;;  %v3407_v15 = vpop.f32.mrf.mxu0 }
 0x2f0   : > { %v2240_v28 = vmax.f32 %v2224_v27, 0.0  ;;  %v2202_v32 = vadd.f32 %v2146_v4, %v1759_v21  ;;  %v3179_v55 = vadd.f32 %v3178_v57, %v3177_v46  ;;  %v1770_v46 = vadd.f32 %v4884_v10, %v1673_v51 }
 0x2f1   : > { %v3180_v61 = vpop.f32.mrf.mxu1  ;;  %v2156_v48 = vpop.f32.mrf.mxu0  ;;  %v3111_v4 = vadd.f32 %v4864_v16, %v4860_v37 }
 0x2f2   : > { %v2149_v50 = vadd.f32 %v3403_v0, %v3179_v55  ;;  %v2255_v2 = vpack.c.bf16 %v2240_v28, %v2239_v41  ;;  %v2225_v39 = vadd.f32 %v4917_v23, %v2202_v32  ;;  %v1775_v28 = vadd.f32 %v4876_v3, %v4862_v38 }
 0x2f3   : > { %v3181_v33 = vpop.f32.mrf.mxu1  ;;  %v3410_v57 = vpop.f32.mrf.mxu0  ;;  %v1681_v10 = vadd.f32 %v3111_v4, %v4834_v43 }
 0x2f4   : > { %v2203_v17 = vadd.f32 %v2149_v50, %v1762_v12  ;;  %v3182_v62 = vadd.f32 %v3181_v33, %v3180_v61  ;;  %3432 = vmatprep.mubr.bf16.mxu0 %v2255_v2  ;;  %v2241_v45 = vmax.f32 %v2225_v39, 0.0 }
 0x2f5   : > { %v3183_v24 = vpop.f32.mrf.mxu1  ;;  %v2169_v50 = vpop.f32.mrf.mxu0  ;;  %v1778_v19 = vadd.f32 %v4880_v30, %v1681_v10 }
 0x2f6   : > { %v2226_v25 = vadd.f32 %v4917_v23, %v2203_v17  ;;  %v2154_v29 = vadd.f32 %v3182_v62, %v2153_v54  ;;  %v3117_v17 = vadd.f32 %v4874_v20, %v4870_v52 }
 0x2f7   : > { %v3184_v0 = vpop.f32.mrf.mxu1  ;;  %v3411_v62 = vpop.f32.mrf.mxu0 }
 0x2f8   : > { %v2242_v63 = vmax.f32 %v2226_v25, 0.0  ;;  %v2204_v8 = vadd.f32 %v2154_v29, %v1767_v35  ;;  %v3185_v5 = vadd.f32 %v3184_v0, %v3183_v24  ;;  %v1783_v35 = vadd.f32 %v4890_v34, %v4872_v53 }
 0x2f9   : > { %v3186_v58 = vpop.f32.mrf.mxu1  ;;  %v1689_v30 = vadd.f32 %v3117_v17, %v4842_v60 }
 0x2fa   : > { %v2256_v21 = vpack.c.bf16 %v2242_v63, %v2241_v45  ;;  %v2157_v27 = vadd.f32 %v3185_v5, %v2156_v48  ;;  %v2227_v47 = vadd.f32 %v4917_v23, %v2204_v8  ;;  %v2172_v45 = vpop.f32.mrf.mxu0  ;;  %v3123_v8 = vadd.f32 %v4886_v44, %v4882_v9 }
 0x2fb   : > { %v3187_v13 = vpop.f32.mrf.mxu1  ;;  %v1786_v5 = vadd.f32 %v4896_v22, %v1689_v30 }
 0x2fc   : > { %v2205_v42 = vadd.f32 %v2157_v27, %v1770_v46  ;;  %v3188_v7 = vadd.f32 %v3187_v13, %v3186_v58  ;;  %3433 = vmatmul.mubr.bf16.vlgmr.msra.gmra.mxu0 %v2256_v21  ;;  %v2243_v37 = vmax.f32 %v2227_v47, 0.0  ;;  %v3414_v27 = vpop.f32.mrf.mxu0  ;;  %v1697_v4 = vadd.f32 %v3123_v8, %v4850_v56 }
 0x2fd   : > { %v3189_v41 = vpop.f32.mrf.mxu1 }
 0x2fe   : > { %v2162_v32 = vadd.f32 %v3406_v36, %v3188_v7  ;;  %v2228_v55 = vadd.f32 %v4917_v23, %v2205_v42 }
 0x2ff   : > { %v3190_v54 = vpop.f32.mrf.mxu1 }
 0x300   : > { %v2206_v61 = vadd.f32 %v2162_v32, %v1775_v28  ;;  %v3191_v12 = vadd.f32 %v3190_v54, %v3189_v41  ;;  %v2244_v16 = vmax.f32 %v2228_v55, 0.0  ;;  %v2185_v41 = vpop.f32.mrf.mxu0  ;;  %v1794_v32 = vadd.f32 %v4892_v59, %v1697_v4 }
 0x301   : > { %v3192_v2 = vpop.f32.mrf.mxu1  ;;  %v3129_v54 = vadd.f32 %v4900_v11, %v4894_v1 }
 0x302   : > { %v2165_v33 = vadd.f32 %v3407_v15, %v3191_v12  ;;  %v2257_v39 = vpack.c.bf16 %v2244_v16, %v2243_v37  ;;  %v2229_v43 = vadd.f32 %v4917_v23, %v2206_v61  ;;  %v3415_v37 = vpop.f32.mrf.mxu0  ;;  %v1799_v16 = vadd.f32 %v4902_v14, %v4898_v6 }
 0x303   : > { %v3193_v38 = vpop.f32.mrf.mxu1  ;;  %v1705_v59 = vadd.f32 %v3129_v54, %v4858_v18 }
 0x304   : > { %v2207_v3 = vadd.f32 %v2165_v33, %v1778_v19  ;;  %v3194_v36 = vadd.f32 %v3193_v38, %v3192_v2  ;;  %3436 = vmatprep.mubr.bf16.mxu0 %v2257_v39  ;;  %v2245_v52 = vmax.f32 %v2229_v43, 0.0  ;;  %v2188_v17 = vpop.f32.mrf.mxu0 }
 0x305   : > { %v3195_v24 = vpop.f32.mrf.mxu1 }
 0x306   : > { %v2170_v25 = vadd.f32 %v3194_v36, %v2169_v50  ;;  %v2230_v29 = vadd.f32 %v4917_v23, %v2207_v3  ;;  %v1802_v3 = vadd.f32 %v4904_v31, %v1705_v59 }
 0x307   : > { %v3196_v15 = vpop.f32.mrf.mxu1 }
 0x308   : > { %v2208_v51 = vadd.f32 %v2170_v25, %v1783_v35  ;;  %v3197_v0 = vadd.f32 %v3196_v15, %v3195_v24  ;;  %v2246_v20 = vmax.f32 %v2230_v29, 0.0 }
 0x309   : > { %v3198_v63 = vpop.f32.mrf.mxu1 }
 0x30a   : > { %v2173_v48 = vadd.f32 %v3197_v0, %v2172_v45  ;;  %v2258_v58 = vpack.c.bf16 %v2246_v20, %v2245_v52  ;;  %v2231_v60 = vadd.f32 %v4917_v23, %v2208_v51 }
 0x30b   : > { %v3199_v53 = vpop.f32.mrf.mxu1 }
 0x30c   : > { %v2209_v34 = vadd.f32 %v2173_v48, %v1786_v5  ;;  %v3200_v46 = vadd.f32 %v3199_v53, %v3198_v63  ;;  %3437 = vmatmul.mubr.bf16.gmra.mxu0 %v2258_v58  ;;  %v2247_v22 = vmax.f32 %v2231_v60, 0.0 }
 0x30d   : > { %v3201_v21 = vpop.f32.mrf.mxu1 }
 0x30e   : > { %v2178_v13 = vadd.f32 %v3410_v57, %v3200_v46  ;;  %v2232_v42 = vadd.f32 %v4917_v23, %v2209_v34 }
 0x30f   : > { %v3202_v7 = vpop.f32.mrf.mxu1 }
 0x310   : > { %v2210_v9 = vadd.f32 %v2178_v13, %v4888_v26  ;;  %v3203_v44 = vadd.f32 %v3202_v7, %v3201_v21  ;;  %v2248_v47 = vmax.f32 %v2232_v42, 0.0 }
 0x311   : > { %v3204_v28 = vpop.f32.mrf.mxu1 }
 0x312   : > { %v2181_v55 = vadd.f32 %v3411_v62, %v3203_v44  ;;  %v2259_v10 = vpack.c.bf16 %v2248_v47, %v2247_v22  ;;  %v2233_v56 = vadd.f32 %v4917_v23, %v2210_v9 }
 0x313   : > { %v3205_v61 = vpop.f32.mrf.mxu1 }
 0x314   : > { %v2211_v57 = vadd.f32 %v2181_v55, %v1794_v32  ;;  %v3206_v12 = vadd.f32 %v3205_v61, %v3204_v28  ;;  %3440 = vmatprep.mubr.bf16.mxu1 %v2259_v10  ;;  %v2249_v33 = vmax.f32 %v2233_v56, 0.0  ;;  %v3745_v61 = vld [vmem:[%s4443_s1 + $0x18] sm:$0xff]  }
 0x315   : > { %v3207_v26 = vpop.f32.mrf.mxu1  ;;  %v2437_v56 = vunpack.c.l.bf16 %v3745_v61 }
 0x316   : > { %v2234_v50 = vadd.f32 %v4917_v23, %v2211_v57  ;;  %v2186_v2 = vadd.f32 %v3206_v12, %v2185_v41  ;;  %v2438_v57 = vunpack.c.h.bf16 %v3745_v61 }
 0x317   : > { %v3208_v19 = vpop.f32.mrf.mxu1 }
 0x318   : > { %v2250_v39 = vmax.f32 %v2234_v50, 0.0  ;;  %v2212_v1 = vadd.f32 %v2186_v2, %v1799_v16  ;;  %v3209_v11 = vadd.f32 %v3208_v19, %v3207_v26  ;;  %v3746_v26 = vld [vmem:[%s4443_s1 + $0x10] sm:$0xff]  }
 0x319   : > { %v3210_v38 = vpop.f32.mrf.mxu1  ;;  %v2435_v16 = vunpack.c.l.bf16 %v3746_v26  ;;  %v2436_v2 = vunpack.c.h.bf16 %v3746_v26 }
 0x31a   : > { %v2260_v36 = vpack.c.bf16 %v2250_v39, %v2249_v33  ;;  %v2189_v43 = vadd.f32 %v3209_v11, %v2188_v17  ;;  %v2235_v6 = vadd.f32 %v4917_v23, %v2212_v1 }
 0x31b   : > { %v3211_v62 = vpop.f32.mrf.mxu1 }
 0x31c   : > { %v2213_v24 = vadd.f32 %v2189_v43, %v1802_v3  ;;  %v3212_v35 = vadd.f32 %v3211_v62, %v3210_v38  ;;  %3441 = vmatmul.mubr.bf16.vlgmr.msra.gmra.mxu1 %v2260_v36  ;;  %v2251_v51 = vmax.f32 %v2235_v6, 0.0  ;;  %v3747_v62 = vld [vmem:[%s4443_s1 + $0x28] sm:$0xff]  }
 0x31d   : > { %v3213_v14 = vpop.f32.mrf.mxu1 }
 0x31e   : > { %v2194_v25 = vadd.f32 %v3414_v27, %v3212_v35  ;;  %v2236_v18 = vadd.f32 %v4917_v23, %v2213_v24  ;;  %v3744_v27 = vld [vmem:[%s4443_s1] sm:$0xff]   ;;  %v2441_v24 = vunpack.c.l.bf16 %v3747_v62  ;;  %v2442_v35 = vunpack.c.h.bf16 %v3747_v62 }
 0x31f   : > { %v3214_v29 = vpop.f32.mrf.mxu1  ;;  %v2432_v4 = vunpack.c.h.bf16 %v3744_v27 }
 0x320   : > { %v2214_v30 = vadd.f32 %v2194_v25, %v4906_v40  ;;  %v3215_v15 = vadd.f32 %v3214_v29, %v3213_v14  ;;  %v2252_v0 = vmax.f32 %v2236_v18, 0.0  ;;  %v4975_v40 = vld [vmem:[%s5210_s8] ss:$0 sm:$0xff] }
 0x321   : > { %v3748_v25 = vld [vmem:[%s4443_s1 + $0x20] sm:$0xff]  }
 0x322   : > { %v2197_v31 = vadd.f32 %v3415_v37, %v3215_v15  ;;  %v2261_v52 = vpack.c.bf16 %v2252_v0, %v2251_v51  ;;  %v2237_v45 = vadd.f32 %v4917_v23, %v2214_v30  ;;  %v2439_v18 = vunpack.c.l.bf16 %v3748_v25 }
 0x323   : > { %v2440_v30 = vunpack.c.h.bf16 %v3748_v25 }
 0x324   : > { %v2215_v20 = vadd.f32 %v2197_v31, %v4911_v49  ;;  %3444 = vmatprep.mubr.bf16.mxu1 %v2261_v52  ;;  %v2253_v8 = vmax.f32 %v2237_v45, 0.0  ;;  %v3743_v49 = vld [vmem:[%s4443_s1 + $0x8] sm:$0xff]  }
 0x325   : > { %v2433_v46 = vunpack.c.l.bf16 %v3743_v49  ;;  %v2434_v60 = vunpack.c.h.bf16 %v3743_v49 }
 0x326   : > { %v2238_v63 = vadd.f32 %v4917_v23, %v2215_v20  ;;  %v2431_v23 = vunpack.c.l.bf16 %v3744_v27 }
 0x328   : > { %v2254_v5 = vmax.f32 %v2238_v63, 0.0 }
 0x32a   : > { %v2262_v48 = vpack.c.bf16 %v2254_v5, %v2253_v8 }
 0x32c   : > { %3445 = vmatmul.mubr.bf16.gmra.mxu1 %v2262_v48 }
 0x3bc   : > { %v3434_v58 = vpop.f32.mrf.mxu0 }
 0x3bd   : > { %v2377_v34 = vadd.f32 %v3434_v58, %v4975_v40  ;;  %v3749_v58 = vld [vmem:[%s4443_s1 + $0x38] sm:$0xff]  }
 0x3be   : > { %v2368_v53 = vpop.f32.mrf.mxu0 }
 0x3bf   : > { %v2369_v13 = vadd.f32 %v4975_v40, %v2368_v53  ;;  %v2449_v9 = vadd.f32 %v2433_v46, %v2377_v34  ;;  %v2445_v53 = vunpack.c.l.bf16 %v3749_v58  ;;  %v2446_v34 = vunpack.c.h.bf16 %v3749_v58 }
 0x3c0   : > { %v3435_v21 = vpop.f32.mrf.mxu0 }
 0x3c1   : > { %v2380_v42 = vadd.f32 %v3435_v21, %v4975_v40  ;;  %v2447_v47 = vadd.f32 %v2431_v23, %v2369_v13 }
 0x3c2   : > { %v2371_v7 = vpop.f32.mrf.mxu0 }
 0x3c3   : > { %v2450_v44 = vadd.f32 %v2434_v60, %v2380_v42  ;;  %v2372_v22 = vadd.f32 %v4975_v40, %v2371_v7  ;;  %v3750_v60 = vld [vmem:[%s4443_s1 + $0x30] sm:$0xff]   ;;  %s5212_s1 = sld [smem:[#allocation44_spill]] }
 0x3c4   : > { %v2443_v21 = vunpack.c.l.bf16 %v3750_v60  ;;  %v2444_v23 = vunpack.c.h.bf16 %v3750_v60 }
 0x3c5   : > { %v2919_v41 = vpack.c.bf16 %v2450_v44, %v2449_v9  ;;  %v2448_v28 = vadd.f32 %v2432_v4, %v2372_v22 }
 0x3c7   : > { %2951 = vst [vmem:[%s4985_s27 + $0x8] sm:$0xff] %v2919_v41   ;;  %v2914_v32 = vpack.c.bf16 %v2448_v28, %v2447_v47 }
 0x3c9   : > { %2915 = vst [vmem:[%s4985_s27] sm:$0xff] %v2914_v32   ;;  %s5017_s26 = scalar_lea.hbm %s5212_s1, %s2890_s9 }
 0x3cc   : > { %v3438_v55 = vpop.f32.mrf.mxu0 }
 0x3cd   : > { %v2393_v54 = vadd.f32 %v3438_v55, %v4975_v40 }
 0x3ce   : > { %v2384_v10 = vpop.f32.mrf.mxu0 }
 0x3cf   : > { %v2385_v37 = vadd.f32 %v4975_v40, %v2384_v10  ;;  %v2453_v19 = vadd.f32 %v2437_v56, %v2393_v54 }
 0x3d0   : > { %v3439_v12 = vpop.f32.mrf.mxu0 }
 0x3d1   : > { %v2396_v50 = vadd.f32 %v3439_v12, %v4975_v40  ;;  %v2451_v1 = vadd.f32 %v2435_v16, %v2385_v37 }
 0x3d2   : > { %v2387_v59 = vpop.f32.mrf.mxu0 }
 0x3d3   : > { %v2454_v33 = vadd.f32 %v2438_v57, %v2396_v50  ;;  %v2388_v39 = vadd.f32 %v4975_v40, %v2387_v59 }
 0x3d5   : > { %v2929_v11 = vpack.c.bf16 %v2454_v33, %v2453_v19  ;;  %v2452_v17 = vadd.f32 %v2436_v2, %v2388_v39 }
 0x3d7   : > { %2953 = vst [vmem:[%s4985_s27 + $0x18] sm:$0xff] %v2929_v11   ;;  %v2924_v38 = vpack.c.bf16 %v2452_v17, %v2451_v1 }
 0x3d9   : > { %2952 = vst [vmem:[%s4985_s27 + $0x10] sm:$0xff] %v2924_v38  }
 0x3dc   : > { %v3442_v3 = vpop.f32.mrf.mxu1 }
 0x3dd   : > { %v2409_v43 = vadd.f32 %v3442_v3, %v4975_v40 }
 0x3de   : > { %v2400_v36 = vpop.f32.mrf.mxu1 }
 0x3df   : > { %v2401_v14 = vadd.f32 %v4975_v40, %v2400_v36  ;;  %v2457_v51 = vadd.f32 %v2441_v24, %v2409_v43 }
 0x3e0   : > { %v3443_v6 = vpop.f32.mrf.mxu1 }
 0x3e1   : > { %v2412_v29 = vadd.f32 %v3443_v6, %v4975_v40  ;;  %v2455_v52 = vadd.f32 %v2439_v18, %v2401_v14 }
 0x3e2   : > { %v2403_v15 = vpop.f32.mrf.mxu1 }
 0x3e3   : > { %v2458_v0 = vadd.f32 %v2442_v35, %v2412_v29  ;;  %v2404_v31 = vadd.f32 %v4975_v40, %v2403_v15 }
 0x3e5   : > { %v2939_v20 = vpack.c.bf16 %v2458_v0, %v2457_v51  ;;  %v2456_v45 = vadd.f32 %v2440_v30, %v2404_v31 }
 0x3e7   : > { %2955 = vst [vmem:[%s4985_s27 + $0x28] sm:$0xff] %v2939_v20   ;;  %v2934_v63 = vpack.c.bf16 %v2456_v45, %v2455_v52 }
 0x3e9   : > { %2954 = vst [vmem:[%s4985_s27 + $0x20] sm:$0xff] %v2934_v63  }
 0x3ec   : > { %v3446_v8 = vpop.f32.mrf.mxu1 }
 0x3ed   : > { %v2425_v48 = vadd.f32 %v3446_v8, %v4975_v40 }
 0x3ee   : > { %v2416_v5 = vpop.f32.mrf.mxu1 }
 0x3ef   : > { %v2417_v46 = vadd.f32 %v4975_v40, %v2416_v5  ;;  %v2461_v13 = vadd.f32 %v2445_v53, %v2425_v48 }
 0x3f0   : > { %v3447_v49 = vpop.f32.mrf.mxu1 }
 0x3f1   : > { %v2428_v27 = vadd.f32 %v3447_v49, %v4975_v40  ;;  %v2459_v9 = vadd.f32 %v2443_v21, %v2417_v46 }
 0x3f2   : > { %v2419_v4 = vpop.f32.mrf.mxu1 }
 0x3f3   : > { %v2462_v42 = vadd.f32 %v2446_v34, %v2428_v27  ;;  %v2420_v7 = vadd.f32 %v4975_v40, %v2419_v4 }
 0x3f5   : > { %v2949_v44 = vpack.c.bf16 %v2462_v42, %v2461_v13  ;;  %v2460_v22 = vadd.f32 %v2444_v23, %v2420_v7 }
 0x3f7   : > { %2957 = vst [vmem:[%s4985_s27 + $0x38] sm:$0xff] %v2949_v44   ;;  %v2944_v47 = vpack.c.bf16 %v2460_v22, %v2459_v9 }
 0x3f9   : > { %2956 = vst [vmem:[%s4985_s27 + $0x30] sm:$0xff] %v2944_v47  }
 0x3fa   : > { %3926 = shalt.err (!%p3923_p4)
}
 0x3fb   : > { %s3927_s25 = scalar_lea.hbm %s5017_s26, 1024  ;;  %s3931_s19 = scalar_lea.hbm %s5212_s1, 4096 }
 0x3fc   : > { %p3928_p10 = scmp.ne.s32.totalorder %s5017_s26, %s3927_s25  ;;  %p3932_p3 = scmp.lt.s32.totalorder %s5017_s26, %s5212_s1 }
 0x3fd   : > { %p3933_p2 = scmp.lt.s32.totalorder %s3931_s19, %s3927_s25 }
 0x3fe   : > { %p3929_p5 = pnand %p3928_p10, %p5213_p1 }
 0x3ff   : > { %p3934_p9 = por %p3933_p2, %p3932_p3 }
 0x400   : > { %p3930_p8 = pneg %p3929_p5 }
 0x402   : > { %p3935_p13 = pnand %p3934_p9, %p3930_p8 }
 0x404   : > { %3938 = shalt.err (!%p3935_p13)
}
 0x405   : > { %s4086_s21 = smov 64   ;;  %s4087_s4 = smov 4  }
 0x406   : > { %3482 = dma.vmem_to_hbm [thread:$0]  (%p5213_p1), %s5019_s10, 1024, %s5017_s26, %s2544_s28, %s4086_s21, %s4086_s21, %s4087_s4  }
 0x407 PF: > { %p3515_p6 = scmp.ge.s32.totalorder %s4073_s22, 2  ;;  %s2575_s12 = sand.u32 1, %s4045_s15  }
 0x408   : > { %p5214_p12 = scmp.ne.s32.totalorder %s5173_s29, 0  ;;  %s2576_s2 = scalar_lea.sflag [#allocation4], %s2575_s12 }
 0x40a   : > { %p3505_p7 = pnand %p3515_p6, %p5214_p12 }
 0x40c   : > { %p3506_p11 = pneg %p3505_p7 }
 0x40e   : > { %4016 = dma.done.wait (%p3506_p11), %s2576_s2, 1024  }
 0x40f   : > { %4018 = vsyncadd (%p3506_p11), %s2576_s2, 4294966272  ;;  %s30_s22 = sadd.s32 1, %s4073_s22   ;;  %s5216_s11 = sld [smem:[#allocation21_spill]] }
 0x410   : > { %p5051_p0 = scmp.ge.s32.totalorder %s30_s22, 6   ;;  %s5217_s10 = sld [smem:[#allocation22_spill]] }
 0x411   : > { %s5218_s12 = sld [smem:[#allocation23_spill]]  ;;  %s5220_s29 = smov %s4349_s30 }
 0x412   : > { %s5219_s20 = sld [smem:[#allocation34_spill]]  ;;  %s5227_s13 = smov %s4041_s14 }
 0x413   : > { %s5221_s18 = sld [smem:[#allocation26_spill]]  ;;  %s5229_s15 = smov %s4049_s16 }
 0x414   : > { %s5222_s19 = sld [smem:[#allocation27_spill]]  ;;  %s5230_s16 = smov %s4053_s17 }
 0x415   : > { %s5223_s23 = sld [smem:[#allocation29_spill]]  ;;  %s5225_s30 = smov %s5216_s11 }
 0x416   : > { %s5224_s21 = sld [smem:[#allocation30_spill]]  ;;  %s5226_s11 = smov %s5248_s3 }
 0x417   : > { %s5231_s17 = smov %s5220_s29  ;;  %29 = sbr.rel (!%p5051_p0) target bundleno = 25 (0x19), region = 139 }
 0x418   : > { %s5228_s14 = smov %s5219_s20 }
 0x41b   : > { %s5232_s20 = smov %s5223_s23 }
 0x41c   :  { %2581 = vsyncpa [#allocation3], 1 }
 0x41d   :  { %2583 = vsyncpa [#allocation3 + $0x1], 1 }
 0x41e   :  { %2584 = vsyncpa [#allocation6], 1 }
 0x41f   :  { %2586 = vsyncpa [#allocation6 + $0x1], 1 }
 0x420   :  { %2587 = vsyncpa [#allocation9], 1 }
 0x421   :  { %2588 = vsyncpa [#allocation12], 1 }
 0x422   :  { %2589 = vsyncpa [#allocation4], 1 }
 0x423   :  { %2591 = vsyncpa [#allocation4 + $0x1], 1 }

</bundles_post_ra>
